<compile_context>
chip_gen: v5e
topology: v5e:2x2
jax: 0.10.0
libtpu: 0.0.40
codegen_flags: <defaults>
</compile_context>

<pallas_src>
import jax
import jax.numpy as jnp
from jax.experimental import pallas as pl
from jax.experimental.pallas import tpu as pltpu


def disc_kernel(x_ref, w1_ref, b1_ref, w2_ref, b2_ref, o_ref):
    # x_ref : (TB, D)  f32    (batch tile on sublanes, features on lanes)
    # w1_ref: (D, H)   bf16   (pre-transposed Linear(D,H) weight, resident)
    # b1_ref: (1, H)   f32    (resident)
    # w2_ref: (1, H)   f32    (Linear(H,1) weight row, resident)
    # b2_ref: (1, 1)   f32    (SMEM scalar)
    # o_ref : (TB, 1)  f32

    # Cast the streamed tile to bf16 in-register (VPU has slack; avoids a
    # separate HBM convert pass in the wrapper).
    x_bf16 = x_ref[...].astype(jnp.bfloat16)

    # Linear 1 on the MXU, f32 accumulation.
    h = jnp.dot(x_bf16, w1_ref[...], preferred_element_type=jnp.float32)
    h = h + b1_ref[...]

    # LeakyReLU(0.1) as a single vmax.
    h = jnp.maximum(h, 0.1 * h)

    # Linear 2 without an N=1 matmul: VPU multiply + lane reduce (XLU).
    y = jnp.sum(h * w2_ref[...], axis=-1, keepdims=True) + b2_ref[0, 0]

    # Sigmoid: exp on EUP, exact reciprocal (cheap; exp dominates EUP cost).
    o_ref[...] = pl.reciprocal(1.0 + jnp.exp(-y), approx=False).astype(o_ref.dtype)


def _pick_tile_b(batch, max_tile=2048):
    """Large tiles amortize per-step overhead; small batches get ~2 balanced
    tiles so both v7x TensorCores process mostly-real rows."""
    half = -(-batch // 2)                 # ceil(batch / 2)
    tile = ((half + 7) // 8) * 8          # round up to a multiple of 8
    return max(8, min(tile, max_tile))


def discriminator_forward(x, w1_t, b1, w2_row, b2, *, tile_b=None):
    """x: (B, D) float32. Returns sigmoid(LeakyReLU(x@W1+b1)@W2+b2), shape (B, 1)."""
    B, D = x.shape
    H = w1_t.shape[1]  # 128

    if tile_b is None:
        tile_b = _pick_tile_b(B)
    n_tiles = pl.cdiv(B, tile_b)

    # Only the tiny, grid-resident operands are reshaped/cast in the wrapper;
    # the dominant x stream is consumed as-is (no convert/pad HBM passes).
    w1_bf16 = w1_t.astype(jnp.bfloat16)
    b1_f32 = b1.astype(jnp.float32).reshape(1, H)
    w2_f32 = w2_row.astype(jnp.float32).reshape(1, H)
    b2_f32 = b2.astype(jnp.float32).reshape(1, 1)

    out = pl.pallas_call(
        disc_kernel,
        out_shape=jax.ShapeDtypeStruct((B, 1), jnp.float32),
        grid_spec=pltpu.PrefetchScalarGridSpec(
            num_scalar_prefetch=0,
            grid=(n_tiles,),
            in_specs=[
                pl.BlockSpec((tile_b, D), lambda i: (i, 0)),   # x tile (f32, ragged last block OK)
                pl.BlockSpec((D, H), lambda i: (0, 0)),        # W1^T, constant block (resident)
                pl.BlockSpec((1, H), lambda i: (0, 0)),        # b1, constant block
                pl.BlockSpec((1, H), lambda i: (0, 0)),        # W2 row, constant block
                pl.BlockSpec(memory_space=pltpu.MemorySpace.SMEM),  # b2 scalar in SMEM
            ],
            out_specs=pl.BlockSpec((tile_b, 1), lambda i: (i, 0)),
        ),
        compiler_params=pltpu.CompilerParams(
            # Independent batch tiles -> megacore sharding on v7x.
            dimension_semantics=("parallel",),
            # 32 MiB scoped VMEM: covers the double-buffered f32 x stream at
            # tile_b=2048 (~13 MiB) on all of v5e/v6e/v7x.
            vmem_limit_bytes=32 * 1024 * 1024,
        ),
    )(x, w1_bf16, b1_f32, w2_f32, b2_f32)

    return out


def init_params(key, img_dim, hidden=128):
    """Deterministic init mirroring nn.Linear default U(-1/sqrt(fan_in), 1/sqrt(fan_in))."""
    k1, k2, k3, k4 = jax.random.split(key, 4)
    bound1 = 1.0 / jnp.sqrt(img_dim)
    bound2 = 1.0 / jnp.sqrt(hidden)
    w1_t = jax.random.uniform(k1, (img_dim, hidden), jnp.float32, -bound1, bound1)  # (in, out)
    b1 = jax.random.uniform(k2, (1, hidden), jnp.float32, -bound1, bound1)
    w2_row = jax.random.uniform(k3, (1, hidden), jnp.float32, -bound2, bound2)      # PyTorch (out, in)
    b2 = jax.random.uniform(k4, (1, 1), jnp.float32, -bound2, bound2)
    return w1_t, b1, w2_row, b2


if __name__ == "__main__":
    img_dim = 28 * 28   # 784, as in the reference module
    batch = 300         # not a multiple of the tile -> exercises the ragged last block

    key = jax.random.PRNGKey(0)
    kx, kp = jax.random.split(key)
    x = jax.random.normal(kx, (batch, img_dim), jnp.float32)
    w1_t, b1, w2_row, b2 = init_params(kp, img_dim)

    out = discriminator_forward(x, w1_t, b1, w2_row, b2)   # auto tile_b: 152 -> grid=(2,)
    out = jax.block_until_ready(out)

    # Pure-JAX f32 reference.
    h_ref = x @ w1_t + b1
    h_ref = jnp.where(h_ref > 0, h_ref, 0.1 * h_ref)
    y_ref = jax.nn.sigmoid(h_ref @ w2_row.T + b2)

    assert out.shape == (batch, 1)
    # bf16 matmul inputs -> looser tolerance vs the f32 reference.
    assert jnp.allclose(out, y_ref, atol=2e-2, rtol=2e-2)

    print("KERNEL_OK")
</pallas_src>

<mosaic_0001>
module attributes {stable_mosaic.version = 11 : i64} {
  func.func @disc_kernel(%arg0: i32, %arg1: memref<152x784xf32, #tpu.memory_space<vmem>>, %arg2: memref<784x128xbf16, #tpu.memory_space<vmem>>, %arg3: memref<1x128xf32, #tpu.memory_space<vmem>>, %arg4: memref<1x128xf32, #tpu.memory_space<vmem>>, %arg5: memref<1x1xf32, #tpu.memory_space<smem>>, %arg6: memref<152x1xf32, #tpu.memory_space<vmem>>) attributes {dimension_semantics = [#tpu.dimension_semantics<parallel>], iteration_bounds = array<i64: 2>, scalar_prefetch = 0 : i64, scratch_operands = 0 : i64, tpu.core_type = #tpu.core_type<tc>, window_params = [{transform_indices = @transform_0, window_bounds = array<i64: 152, 784>}, {pipeline_mode = #tpu.pipeline_mode<synchronous>, transform_indices = @transform_1, window_bounds = array<i64: 784, 128>}, {pipeline_mode = #tpu.pipeline_mode<synchronous>, transform_indices = @transform_2, window_bounds = array<i64: 1, 128>}, {pipeline_mode = #tpu.pipeline_mode<synchronous>, transform_indices = @transform_3, window_bounds = array<i64: 1, 128>}, {transform_indices = @transform_4, window_bounds = array<i64: 1, 1>}, {transform_indices = @transform_5, window_bounds = array<i64: 152, 1>}]} {
    %c0 = arith.constant 0 : index
    %c0_0 = arith.constant 0 : index
    %0 = vector.load %arg1[%c0, %c0_0] : memref<152x784xf32, #tpu.memory_space<vmem>>, vector<152x784xf32>
    %1 = arith.truncf %0 : vector<152x784xf32> to vector<152x784xbf16>
    %c0_1 = arith.constant 0 : index
    %c0_2 = arith.constant 0 : index
    %2 = vector.load %arg2[%c0_1, %c0_2] : memref<784x128xbf16, #tpu.memory_space<vmem>>, vector<784x128xbf16>
    %cst = arith.constant dense<0.000000e+00> : vector<152x128xf32>
    %3 = tpu.matmul %1, %2, %cst {dimension_numbers = #tpu.dot_dimension_numbers<[1], [0], [0], [1], [0, 0, 1, 1], [], []>} : vector<152x784xbf16>, vector<784x128xbf16>, vector<152x128xf32> -> vector<152x128xf32>
    %c0_3 = arith.constant 0 : index
    %c0_4 = arith.constant 0 : index
    %4 = vector.load %arg3[%c0_3, %c0_4] : memref<1x128xf32, #tpu.memory_space<vmem>>, vector<1x128xf32>
    %5 = vector.broadcast %4 : vector<1x128xf32> to vector<152x128xf32>
    %6 = arith.addf %3, %5 : vector<152x128xf32>
    %cst_5 = arith.constant 1.000000e-01 : f32
    %7 = vector.broadcast %cst_5 : f32 to vector<152x128xf32>
    %8 = arith.mulf %7, %6 : vector<152x128xf32>
    %9 = arith.maximumf %6, %8 : vector<152x128xf32>
    %c0_6 = arith.constant 0 : index
    %c0_7 = arith.constant 0 : index
    %10 = vector.load %arg4[%c0_6, %c0_7] : memref<1x128xf32, #tpu.memory_space<vmem>>, vector<1x128xf32>
    %11 = vector.broadcast %10 : vector<1x128xf32> to vector<152x128xf32>
    %12 = arith.mulf %9, %11 : vector<152x128xf32>
    %cst_8 = arith.constant dense<0.000000e+00> : vector<152xf32>
    %13 = vector.multi_reduction <add>, %12, %cst_8 [1] : vector<152x128xf32> to vector<152xf32>
    %14 = vector.shape_cast %13 : vector<152xf32> to vector<152x1xf32>
    %c0_9 = arith.constant 0 : index
    %c0_10 = arith.constant 0 : index
    %15 = memref.load %arg5[%c0_9, %c0_10] : memref<1x1xf32, #tpu.memory_space<smem>>
    %16 = vector.broadcast %15 : f32 to vector<152x1xf32>
    %17 = arith.addf %14, %16 : vector<152x1xf32>
    %cst_11 = arith.constant 0.000000e+00 : f32
    %18 = vector.broadcast %cst_11 : f32 to vector<152x1xf32>
    %19 = arith.subf %18, %17 : vector<152x1xf32>
    %20 = math.exp %19 : vector<152x1xf32>
    %cst_12 = arith.constant 1.000000e+00 : f32
    %21 = vector.broadcast %cst_12 : f32 to vector<152x1xf32>
    %22 = arith.addf %21, %20 : vector<152x1xf32>
    %23 = tpu.reciprocal %22 : vector<152x1xf32> -> vector<152x1xf32>
    %c0_13 = arith.constant 0 : index
    %c0_14 = arith.constant 0 : index
    %24 = vector.load %arg6[%c0_13, %c0_14] : memref<152x1xf32, #tpu.memory_space<vmem>>, vector<152x1xf32>
    tpu.vector_store %arg6[%c0_13, %c0_14], %23 {strides = array<i32>} : memref<152x1xf32, #tpu.memory_space<vmem>>, vector<152x1xf32>,
    return
  }
  func.func @transform_0(%arg0: i32) -> (i32, i32) {
    %c0_i32 = arith.constant 0 : i32
    %c0_i32_0 = arith.constant 0 : i32
    return %arg0, %c0_i32 : i32, i32
  }
  func.func @transform_1(%arg0: i32) -> (i32, i32) {
    %c0_i32 = arith.constant 0 : i32
    %c0_i32_0 = arith.constant 0 : i32
    %c0_i32_1 = arith.constant 0 : i32
    return %c0_i32, %c0_i32_0 : i32, i32
  }
  func.func @transform_2(%arg0: i32) -> (i32, i32) {
    %c0_i32 = arith.constant 0 : i32
    %c0_i32_0 = arith.constant 0 : i32
    %c0_i32_1 = arith.constant 0 : i32
    return %c0_i32, %c0_i32_0 : i32, i32
  }
  func.func @transform_3(%arg0: i32) -> (i32, i32) {
    %c0_i32 = arith.constant 0 : i32
    %c0_i32_0 = arith.constant 0 : i32
    %c0_i32_1 = arith.constant 0 : i32
    return %c0_i32, %c0_i32_0 : i32, i32
  }
  func.func @transform_4(%arg0: i32) -> (i32, i32) {
    %c0_i32 = arith.constant 0 : i32
    %c0_i32_0 = arith.constant 0 : i32
    %c0_i32_1 = arith.constant 0 : i32
    return %c0_i32, %c0_i32_0 : i32, i32
  }
  func.func @transform_5(%arg0: i32) -> (i32, i32) {
    %c0_i32 = arith.constant 0 : i32
    %c0_i32_0 = arith.constant 0 : i32
    return %arg0, %c0_i32 : i32, i32
  }
}

</mosaic_0001>

<bundles_post_ra>
// kernel: tpu_custom_call.1
= control target key start
LH: loop header
LB: loop body
LE: loop exit
PB: predicated region body
PF: predicated region fallthrough
CT: control target
= control target key end

     0   :  { %s3097_s0 = inlined_call_operand.hbm [shape: f32[300,784], index: 0, kind: input, shape index: {}]   ;;  %s3098_s1 = inlined_call_operand.hbm [shape: bf16[784,128], index: 1, kind: input, shape index: {}]   ;;  %s3099_s2 = inlined_call_operand.hbm [shape: f32[1,128], index: 2, kind: input, shape index: {}]   ;;  %s3100_s3 = inlined_call_operand.hbm [shape: f32[1,128], index: 3, kind: input, shape index: {}]   ;;  %s3101_s4 = inlined_call_operand.<no memory space> [shape: f32[1,1], index: 4, kind: input, shape index: {}]   ;;  %s3102_s5 = inlined_call_operand.vmem [shape: f32[300,1], index: 5, kind: output, shape index: {}]  }
   0x1   :  { %10 = sst [smem:[#allocation2]] %s3101_s4 }
   0x2   :  { %11 = vsyncpa [#allocation4], 0 }
   0x3   :  { %13 = vsyncpa [#allocation4 + $0x1], 0 }
   0x4   :  { %14 = vsyncpa [#allocation6], 0 }
   0x5   :  { %15 = vsyncpa [#allocation9], 0  ;;  %s2566_s20 = smov 0   ;;  %s2568_s21 = smov 0  }
   0x6   :  { %s2570_s22 = smov 0   ;;  %s2572_s23 = smov 0  }
   0x7 LB: > { %s1912_s4 = sadd.s32 4294967295, %s2524_s23   ;;  %p41_p0 = scmp.ne.s32.totalorder %s2516_s21, %s2512_s20  ;;  %s2524_s23 = sphi %s2572_s23, %s3112_s23   ;;  %s2520_s22 = sphi %s2570_s22, %s3111_s22   ;;  %s2516_s21 = sphi %s2568_s21, %s3110_s21   ;;  %s2512_s20 = sphi %s2566_s20, %s3109_s20  }
   0x8   : > { %p2588_p1 = scmp.eq.s32.totalorder %s1912_s4, 0  ;;  %p1914_p2 = scmp.ge.s32.totalorder %s2524_s23, 1 }
   0x9   : > { %p162_p3 = scmp.lt.s32.totalorder %s2524_s23, 3  ;;  %s173_s28 = sshll.u32 %s3098_s1, 4  ;;  %s174_s28 = int_to_ptr.hbm [resolvable:$true] %s173_s28 }
   0xa   : > { %p2596_p4 = por %p2588_p1, %p41_p0  ;;  %s2526_s30 = smov [#allocation5]  }
   0xb   : > { %p2603_p5 = pnand %p1914_p2, %p162_p3  ;;  %s175_s6 = sshll.u32 %s2526_s30, 4  ;;  %s176_s6 = int_to_ptr.vmem [resolvable:$true] %s175_s6 }
   0xc   : > { %s188_s10 = sshll.u32 %s3099_s2, 4  ;;  %s2527_s11 = smov 64   ;;  %s189_s10 = int_to_ptr.hbm [resolvable:$true] %s188_s10 }
   0xd   : > { %p2223_p6 = pneg %p2603_p5  ;;  %s2528_s12 = smov 4  }
   0xe   : > { %s200_s15 = sshll.u32 %s3100_s3, 4  ;;  %s2529_s16 = smov [#allocation7]   ;;  %s201_s15 = int_to_ptr.hbm [resolvable:$true] %s200_s15 }
   0xf   : > { %p2611_p7 = pnand %p2223_p6, %p2588_p1  ;;  %s190_s17 = sshll.u32 %s2529_s16, 4  ;;  %s191_s17 = int_to_ptr.vmem [resolvable:$true] %s190_s17 }
  0x10   : > { %s2530_s18 = smov [#allocation8]   ;;  %s2628_s20 = sadd.s32 1, %s2524_s23  }
  0x11   : > { %2226 = dma.hbm_to_vmem [thread:$0]  (!%p2611_p7), %s174_s28, 6272, %s176_s6, [#allocation6], %s2527_s11, %s2527_s11, %s2528_s12  }
  0x12   : > { %2229 = dma.hbm_to_vmem [thread:$0]  (!%p2611_p7), %s189_s10, 16, %s191_s17, [#allocation6]  }
  0x13   : > { %s202_s19 = sshll.u32 %s2530_s18, 4  ;;  %s28_s26 = sadd.s32 1, %s2520_s22  ;;  %s203_s19 = int_to_ptr.vmem [resolvable:$true] %s202_s19 }
  0x14   : > { %2232 = dma.hbm_to_vmem [thread:$0]  (!%p2611_p7), %s201_s15, 16, %s203_s19, [#allocation9]  }
  0x15   : > { %s25_s27 = ssub.s32 %s2524_s23, %s2628_s20  ;;  %p35_p8 = scmp.ne.s32.totalorder %s2520_s22, %s2516_s21 }
  0x16   : > { %p26_p9 = scmp.eq.s32.totalorder %s25_s27, 0  ;;  %p36_p10 = scmp.eq.s32.totalorder %s2524_s23, 0 }
  0x17   : > { %p2240_p11 = scmp.lt.s32.totalorder %s2524_s23, 2  ;;  %s216_s28 = sand.u32 1, %s2520_s22  }
  0x18   : > { %s2639_s30 = scalar_select %p26_p9, %s2520_s22, %s28_s26  }
  0x19   : > { %p37_p12 = por %p36_p10, %p35_p8  ;;  %s2206_s6 = smul.u32 1064, %s216_s28 }
  0x1a   : > { %s2241_s8 = smul.u32 1064, %s2524_s23  ;;  %s217_s15 = scalar_lea.sflag [#allocation4], %s216_s28 }
  0x1b   : > { %p2642_p13 = pnand %p2240_p11, %p37_p12  ;;  %s220_s12 = scalar_lea.vmem [#allocation3], %s2206_s6 }
  0x1c   : > { %s226_s11 = scalar_lea.hbm %s3097_s0, %s2241_s8  ;;  %s229_s13 = sshll.u32 %s220_s12, 4  ;;  %s230_s13 = int_to_ptr.vmem [resolvable:$true] %s229_s13 }
  0x1d   : > { %s227_s14 = sshll.u32 %s226_s11, 4  ;;  %p2456_p2 = pneg %p2642_p13  ;;  %s228_s14 = int_to_ptr.hbm [resolvable:$true] %s227_s14 }
  0x1e   : > { %s2452_s16 = sshra.s32 %s228_s14, 4  ;;  %s2459_s26 = scalar_lea.hbm %s3097_s0, 2128  ;;  %s2453_s16 = int_to_ptr.hbm [resolvable:$true] %s2452_s16 }
  0x1f   : > { %s2454_s17 = scalar_lea.hbm %s2453_s16, 1064  ;;  %p2460_p7 = scmp.lt.s32.totalorder %s2453_s16, %s3097_s0 }
  0x20   : > { %p2455_p0 = scmp.ne.s32.totalorder %s2453_s16, %s2454_s17  ;;  %p2461_p8 = scmp.lt.s32.totalorder %s2459_s26, %s2454_s17 }
  0x22   : > { %p2457_p3 = pnand %p2456_p2, %p2455_p0  ;;  %p2462_p9 = por %p2461_p8, %p2460_p7 }
  0x24   : > { %p2458_p6 = pneg %p2457_p3 }
  0x26   : > { %p2463_p10 = pnand %p2462_p9, %p2458_p6 }
  0x28   : > { %2466 = shalt.err (!%p2463_p10)
}
  0x29   : > { %s2531_s28 = smov 896   ;;  %s2532_s6 = smov 56  }
  0x2a   : > { %2236 = dma.hbm_to_vmem [thread:$0]  (!%p2642_p13), %s228_s14, 17024, %s230_s13, %s217_s15, %s2531_s28, %s2531_s28, %s2532_s6  }
  0x2b   : > { %241 = sbr.rel (%p2603_p5) target bundleno = 652 (0x28c), region = 40  ;;  %s243_s7 = sand.u32 (!%p2603_p5), 1, %s2516_s21  }
  0x2c   : > { %s2208_s10 = smul.u32 (!%p2603_p5), 1064, %s243_s7  ;;  %s244_s11 = scalar_lea.sflag (!%p2603_p5), [#allocation4], %s243_s7 }
  0x2e   : > { %s2662_s12 = scalar_lea.vmem (!%p2603_p5), [#allocation3], %s2208_s10 }
  0x30   : > { %2499 = dma.done.wait (%p2596_p4), %s244_s11, 17024  }
  0x31   : > { %2501 = vsyncadd (%p2596_p4), %s244_s11, 4294950272 }
  0x32   : > { %2503 = dma.done.wait (%p2588_p1), [#allocation6], 6288  }
  0x33   : > { %2505 = vsyncadd (%p2588_p1), [#allocation6], 4294961008 }
  0x34   : > { %2507 = dma.done.wait (%p2588_p1), [#allocation9], 16  }
  0x35   : > { %2509 = vsyncadd (%p2588_p1), [#allocation9], 4294967280  ;;  %v2140_v0 = vld [vmem:[#allocation5 + $0x38] sm:$0xff]  ;;  %v2139_v3 = vld [vmem:[#allocation5 + $0x30] sm:$0xff]  ;;  %vm897_vm0 = vcmask 130048   ;;  %s1433_s24 = sld [smem:[#allocation2]] }
  0x36   : > { %v2676_v1 = vld [vmem:[#allocation5 + $0xb8] sm:$0xff]  ;;  %928 = vmatpush.bf16.msra.mxu0 %v2140_v0  ;;  %2182 = vmatpush.bf16.msra.mxu3 %v2140_v0  ;;  %v2682_v4 = vld [vmem:[#allocation5 + $0xb0] sm:$0xff]  ;;  %v2138_v6 = vld [vmem:[#allocation5 + $0x28] sm:$0xff]  ;;  %s291_s25 = smul.u32 19, %s1912_s4  ;;  %vm1796_vm3 = vcmask 7168  }
  0x37   : > { %v2678_v2 = vld [vmem:[#allocation5 + $0x78] sm:$0xff]  ;;  %2198 = vmatpush.bf16.msra.mxu2 %v2676_v1  ;;  %v2684_v5 = vld [vmem:[#allocation5 + $0x70] sm:$0xff]  ;;  %v2688_v7 = vld [vmem:[#allocation5 + $0xa8] sm:$0xff] }
  0x38   : > { %2190 = vmatpush.bf16.msra.mxu1 %v2678_v2  ;;  %v2690_v8 = vld [vmem:[#allocation5 + $0x68] sm:$0xff]  ;;  %v2137_v9 = vld [vmem:[#allocation5 + $0x20] sm:$0xff]  ;;  %v2136_v12 = vld [vmem:[#allocation5 + $0x18] sm:$0xff]  ;;  %p292_p1 = scmp.lt.s32.totalorder %s291_s25, 37 }
  0x39   : > { %v2694_v10 = vld [vmem:[#allocation5 + $0xa0] sm:$0xff]  ;;  %v2700_v13 = vld [vmem:[#allocation5 + $0x98] sm:$0xff]  ;;  %v2135_v15 = vld [vmem:[#allocation5 + $0x10] sm:$0xff] }
  0x3a   : > { %929 = vmatpush.bf16.msra.mxu0 %v2139_v3  ;;  %2183 = vmatpush.bf16.msra.mxu3 %v2139_v3  ;;  %v2696_v11 = vld [vmem:[#allocation5 + $0x60] sm:$0xff]  ;;  %v2702_v14 = vld [vmem:[#allocation5 + $0x58] sm:$0xff]  ;;  %v2706_v16 = vld [vmem:[#allocation5 + $0x90] sm:$0xff]  ;;  %s3114_s25 = smov (!%p292_p1, %s291_s25), 37 }
  0x3b   : > { %2199 = vmatpush.bf16.msra.mxu2 %v2682_v4  ;;  %v2708_v17 = vld [vmem:[#allocation5 + $0x50] sm:$0xff]  ;;  %v2134_v18 = vld [vmem:[#allocation5 + $0x8] sm:$0xff]  ;;  %v2133_v21 = vld [vmem:[#allocation5] sm:$0xff]  ;;  %s1924_s23 = sshll.u32 %s3114_s25, 3 }
  0x3c   : > { %2191 = vmatpush.bf16.msra.mxu1 %v2684_v5  ;;  %v2712_v19 = vld [vmem:[#allocation5 + $0x88] sm:$0xff]  ;;  %v2716_v22 = vld [vmem:[#allocation5 + $0x80] sm:$0xff]  ;;  %v298_v24 = vld [vmem:[%s2662_s12] sm:$0xff]  ;;  %s3029_s9 = scalar_lea.vmem %s3102_s5, %s1924_s23 }
  0x3d   : > { %v2714_v20 = vld [vmem:[#allocation5 + $0x48] sm:$0xff]  ;;  %v2718_v23 = vld [vmem:[#allocation5 + $0x40] sm:$0xff]  ;;  %v326_v26 = vld [vmem:[%s2662_s12 + $0xe0] sm:$0xff] }
  0x3e   : > { %930 = vmatpush.bf16.msra.mxu0 %v2138_v6  ;;  %2184 = vmatpush.bf16.msra.mxu3 %v2138_v6  ;;  %v305_v25 = vld [vmem:[%s2662_s12 + $0x38] sm:$0xff]  ;;  %v328_v28 = vld [vmem:[%s2662_s12 + $0xf0] sm:$0xff]  ;;  %v335_v29 = vld [vmem:[%s2662_s12 + $0x128] sm:$0xff] }
  0x3f   : > { %2200 = vmatpush.bf16.msra.mxu2 %v2688_v7  ;;  %v333_v27 = vld [vmem:[%s2662_s12 + $0x118] sm:$0xff]  ;;  %v327_v30 = vld [vmem:[%s2662_s12 + $0xe8] sm:$0xff]  ;;  %v334_v31 = vld [vmem:[%s2662_s12 + $0x120] sm:$0xff]  ;;  %v431_v33 = vpack.c.bf16 %v305_v25, %v298_v24  ;;  %v447_v35 = vpack.c.bf16 %v335_v29, %v328_v28 }
  0x40   : > { %2192 = vmatpush.bf16.msra.mxu1 %v2690_v8  ;;  %v2164_v32 = vld [vmem:[#allocation5 + $0xf8] sm:$0xff]  ;;  %v445_v34 = vpack.c.bf16 %v333_v27, %v326_v26  ;;  %v446_v36 = vpack.c.bf16 %v334_v31, %v327_v30  ;;  %v2181_v37 = vld [vmem:[#allocation5 + $0x180] sm:$0xff]  ;;  %v2163_v39 = vld [vmem:[#allocation5 + $0xf0] sm:$0xff] }
  0x41   : > { %v2180_v38 = vld [vmem:[#allocation5 + $0x178] sm:$0xff]  ;;  %v2179_v40 = vld [vmem:[#allocation5 + $0x170] sm:$0xff]  ;;  %v2162_v41 = vld [vmem:[#allocation5 + $0xe8] sm:$0xff] }
  0x42   : > { %931 = vmatpush.bf16.msra.mxu0 %v2137_v9  ;;  %2185 = vmatpush.bf16.msra.mxu3 %v2137_v9  ;;  %v2178_v42 = vld [vmem:[#allocation5 + $0x168] sm:$0xff]  ;;  %v319_v44 = vld [vmem:[%s2662_s12 + $0xa8] sm:$0xff]  ;;  %v342_v47 = vld [vmem:[%s2662_s12 + $0x160] sm:$0xff] }
  0x43   : > { %2201 = vmatpush.bf16.msra.mxu2 %v2694_v10  ;;  %v312_v43 = vld [vmem:[%s2662_s12 + $0x70] sm:$0xff]  ;;  %v347_v46 = vld [vmem:[%s2662_s12 + $0x188] sm:$0xff]  ;;  %v349_v48 = vld [vmem:[%s2662_s12 + $0x198] sm:$0xff] }
  0x44   : > { %2193 = vmatpush.bf16.msra.mxu1 %v2696_v11  ;;  %v340_v45 = vld [vmem:[%s2662_s12 + $0x150] sm:$0xff]  ;;  %v341_v49 = vld [vmem:[%s2662_s12 + $0x158] sm:$0xff]  ;;  %v438_v51 = vpack.c.bf16 %v319_v44, %v312_v43  ;;  %v454_v53 = vpack.c.bf16 %v349_v48, %v342_v47  ;;  %v354_v57 = vld [vmem:[%s2662_s12 + $0x1c0] sm:$0xff] }
  0x45   : > { %v348_v50 = vld [vmem:[%s2662_s12 + $0x190] sm:$0xff]  ;;  %v452_v52 = vpack.c.bf16 %v347_v46, %v340_v45  ;;  %v361_v58 = vld [vmem:[%s2662_s12 + $0x1f8] sm:$0xff]  ;;  %v299_v59 = vld [vmem:[%s2662_s12 + $0x8] sm:$0xff] }
  0x46   : > { %932 = vmatpush.bf16.msra.mxu0 %v2136_v12  ;;  %2186 = vmatpush.bf16.msra.mxu3 %v2136_v12  ;;  %v453_v54 = vpack.c.bf16 %v348_v50, %v341_v49  ;;  %v2161_v55 = vld [vmem:[#allocation5 + $0xe0] sm:$0xff]  ;;  %v306_v60 = vld [vmem:[%s2662_s12 + $0x40] sm:$0xff]  ;;  %v313_v12 = vld [vmem:[%s2662_s12 + $0x78] sm:$0xff] }
  0x47   : > { %2202 = vmatpush.bf16.msra.mxu2 %v2700_v13  ;;  %v2177_v56 = vld [vmem:[#allocation5 + $0x160] sm:$0xff]  ;;  %v362_v0 = vld [vmem:[%s2662_s12 + $0x200] sm:$0xff]  ;;  %v432_v3 = vpack.c.bf16 %v306_v60, %v299_v59  ;;  %v389_v26 = vld [vmem:[%s2662_s12 + $0x2d8] sm:$0xff] }
  0x48   : > { %2194 = vmatpush.bf16.msra.mxu1 %v2702_v14  ;;  %v356_v61 = vld [vmem:[%s2662_s12 + $0x1d0] sm:$0xff]  ;;  %v363_v62 = vld [vmem:[%s2662_s12 + $0x208] sm:$0xff]  ;;  %v382_v25 = vld [vmem:[%s2662_s12 + $0x2a0] sm:$0xff] }
  0x49   : > { %v355_v63 = vld [vmem:[%s2662_s12 + $0x1c8] sm:$0xff]  ;;  %v300_v27 = vld [vmem:[%s2662_s12 + $0x10] sm:$0xff]  ;;  %v390_v31 = vld [vmem:[%s2662_s12 + $0x2e0] sm:$0xff] }
  0x4a   : > { %933 = vmatpush.bf16.msra.mxu0 %v2135_v15  ;;  %2187 = vmatpush.bf16.msra.mxu3 %v2135_v15  ;;  %v460_v6 = vpack.c.bf16 %v362_v0, %v355_v63  ;;  %v2176_v9 = vld [vmem:[#allocation5 + $0x158] sm:$0xff]  ;;  %v405_v43 = vld [vmem:[%s2662_s12 + $0x358] sm:$0xff]  ;;  %v404_v45 = vld [vmem:[%s2662_s12 + $0x350] sm:$0xff] }
  0x4b   : > { %2203 = vmatpush.bf16.msra.mxu2 %v2706_v16  ;;  %v370_v15 = vld [vmem:[%s2662_s12 + $0x240] sm:$0xff]  ;;  %v307_v28 = vld [vmem:[%s2662_s12 + $0x48] sm:$0xff]  ;;  %v397_v44 = vld [vmem:[%s2662_s12 + $0x318] sm:$0xff] }
  0x4c   : > { %2195 = vmatpush.bf16.msra.mxu1 %v2708_v17  ;;  %v391_v29 = vld [vmem:[%s2662_s12 + $0x2e8] sm:$0xff]  ;;  %v481_v50 = vpack.c.bf16 %v404_v45, %v397_v44 }
  0x4d   : > { %v383_v30 = vld [vmem:[%s2662_s12 + $0x2a8] sm:$0xff] }
  0x4e   : > { %934 = vmatpush.bf16.msra.mxu0 %v2134_v18  ;;  %2188 = vmatpush.bf16.msra.mxu3 %v2134_v18  ;;  %v369_v18 = vld [vmem:[%s2662_s12 + $0x238] sm:$0xff]  ;;  %v2169_v46 = vld [vmem:[#allocation5 + $0x120] sm:$0xff] }
  0x4f   : > { %2204 = vmatpush.bf16.msra.mxu2 %v2712_v19  ;;  %v419_v59 = vld [vmem:[%s2662_s12 + $0x3c8] sm:$0xff] }
  0x50   : > { %2196 = vmatpush.bf16.msra.mxu1 %v2714_v20  ;;  %v411_v60 = vld [vmem:[%s2662_s12 + $0x388] sm:$0xff] }
  0x51   : > { %v2165_v63 = vld [vmem:[#allocation5 + $0x100] sm:$0xff] }
  0x52   : > { %935 = vmatpush.bf16.msra.mxu0 %v2133_v21  ;;  %2189 = vmatpush.bf16.msra.mxu3 %v2133_v21 }
  0x53   : > { %2205 = vmatpush.bf16.msra.mxu2 %v2716_v22 }
  0x54   : > { %2197 = vmatpush.bf16.msra.mxu1 %v2718_v23 }
  0x55   : > { %936 = vmatmul.bf16.vlgmr.msra.gmra.mxu0 %v431_v33  ;;  %946 = vmatmul.bf16.vlgmr.msra.gmra.mxu3 %v445_v34  ;;  %v433_v33 = vpack.c.bf16 %v307_v28, %v300_v27 }
  0x56   : > { %1102 = vmatpush.bf16.msrb.mxu3 %v2164_v32  ;;  %986 = vmatpush.bf16.msrb.mxu0 %v2678_v2  ;;  %v459_v2 = vpack.c.bf16 %v361_v58, %v354_v57  ;;  %v473_v32 = vpack.c.bf16 %v389_v26, %v382_v25  ;;  %v417_v57 = vld [vmem:[%s2662_s12 + $0x3b8] sm:$0xff]  ;;  %v412_v58 = vld [vmem:[%s2662_s12 + $0x390] sm:$0xff] }
  0x57   : > { %1062 = vmatmul.bf16.vlgmr.msra.gmra.mxu2 %v447_v35  ;;  %1004 = vmatmul.bf16.vlgmr.msra.gmra.mxu1 %v446_v36  ;;  %v2171_v35 = vld [vmem:[#allocation5 + $0x130] sm:$0xff]  ;;  %v2174_v36 = vld [vmem:[#allocation5 + $0x148] sm:$0xff]  ;;  %v489_v0 = vpack.c.bf16 %v419_v59, %v412_v58 }
  0x58   : > { %1283 = vmatpush.bf16.msrb.mxu2 %v2181_v37  ;;  %1218 = vmatpush.bf16.msrb.mxu1 %v2180_v38  ;;  %v2170_v37 = vld [vmem:[#allocation5 + $0x128] sm:$0xff] }
  0x59   : > { %v396_v38 = vld [vmem:[%s2662_s12 + $0x310] sm:$0xff] }
  0x5a   : > { %987 = vmatpush.bf16.msrb.mxu0 %v2684_v5  ;;  %1103 = vmatpush.bf16.msrb.mxu3 %v2163_v39  ;;  %v461_v5 = vpack.c.bf16 %v363_v62, %v356_v61  ;;  %v403_v39 = vld [vmem:[%s2662_s12 + $0x348] sm:$0xff]  ;;  %v418_v61 = vld [vmem:[%s2662_s12 + $0x3c0] sm:$0xff] }
  0x5b   : > { %v480_v47 = vpack.c.bf16 %v403_v39, %v396_v38  ;;  %v318_v38 = vld [vmem:[%s2662_s12 + $0xa0] sm:$0xff]  ;;  %v325_v39 = vld [vmem:[%s2662_s12 + $0xd8] sm:$0xff] }
  0x5c   : > { %1219 = vmatpush.bf16.msrb.mxu1 %v2179_v40  ;;  %v314_v40 = vld [vmem:[%s2662_s12 + $0x80] sm:$0xff] }
  0x5e   : > { %988 = vmatpush.bf16.msrb.mxu0 %v2690_v8  ;;  %1104 = vmatpush.bf16.msrb.mxu3 %v2162_v41  ;;  %v2160_v8 = vld [vmem:[#allocation5 + $0xd8] sm:$0xff]  ;;  %v321_v41 = vld [vmem:[%s2662_s12 + $0xb8] sm:$0xff] }
  0x5f   : > { %v440_v48 = vpack.c.bf16 %v321_v41, %v314_v40  ;;  %v317_v40 = vld [vmem:[%s2662_s12 + $0x98] sm:$0xff]  ;;  %v324_v41 = vld [vmem:[%s2662_s12 + $0xd0] sm:$0xff] }
  0x60   : > { %1220 = vmatpush.bf16.msrb.mxu1 %v2178_v42  ;;  %v398_v42 = vld [vmem:[%s2662_s12 + $0x320] sm:$0xff] }
  0x61   : > { %v482_v49 = vpack.c.bf16 %v405_v43, %v398_v42 }
  0x62   : > { %989 = vmatpush.bf16.msrb.mxu0 %v2696_v11  ;;  %1105 = vmatpush.bf16.msrb.mxu3 %v2161_v55  ;;  %v375_v11 = vld [vmem:[%s2662_s12 + $0x268] sm:$0xff]  ;;  %v2166_v55 = vld [vmem:[#allocation5 + $0x108] sm:$0xff] }
  0x64   : > { %1221 = vmatpush.bf16.msrb.mxu1 %v2177_v56  ;;  %v410_v56 = vld [vmem:[%s2662_s12 + $0x380] sm:$0xff] }
  0x65   : > { %941 = vmatmul.bf16.gmra.mxu0 %v438_v51  ;;  %951 = vmatmul.bf16.gmra.mxu3 %v452_v52  ;;  %v2168_v51 = vld [vmem:[#allocation5 + $0x118] sm:$0xff]  ;;  %v2157_v52 = vld [vmem:[#allocation5 + $0xc0] sm:$0xff]  ;;  %v487_v62 = vpack.c.bf16 %v417_v57, %v410_v56 }
  0x66   : > { %990 = vmatpush.bf16.msrb.mxu0 %v2702_v14  ;;  %1106 = vmatpush.bf16.msrb.mxu3 %v2160_v8  ;;  %v320_v14 = vld [vmem:[%s2662_s12 + $0xb0] sm:$0xff] }
  0x67   : > { %1067 = vmatmul.bf16.gmra.mxu2 %v454_v53  ;;  %1009 = vmatmul.bf16.gmra.mxu1 %v453_v54  ;;  %v2167_v53 = vld [vmem:[#allocation5 + $0x110] sm:$0xff]  ;;  %v2173_v54 = vld [vmem:[#allocation5 + $0x140] sm:$0xff] }
  0x68   : > { %1222 = vmatpush.bf16.msrb.mxu1 %v2176_v9  ;;  %v424_v8 = vld [vmem:[%s2662_s12 + $0x3f0] sm:$0xff]  ;;  %v426_v9 = vld [vmem:[%s2662_s12 + $0x400] sm:$0xff] }
  0x6a   : > { %991 = vmatpush.bf16.msrb.mxu0 %v2708_v17  ;;  %v377_v17 = vld [vmem:[%s2662_s12 + $0x278] sm:$0xff] }
  0x6e   : > { %992 = vmatpush.bf16.msrb.mxu0 %v2714_v20  ;;  %v376_v20 = vld [vmem:[%s2662_s12 + $0x270] sm:$0xff] }
  0x6f   : > { %v467_v24 = vpack.c.bf16 %v376_v20, %v369_v18  ;;  %v301_v20 = vld [vmem:[%s2662_s12 + $0x18] sm:$0xff] }
  0x72   : > { %993 = vmatpush.bf16.msrb.mxu0 %v2718_v23  ;;  %v439_v23 = vpack.c.bf16 %v320_v14, %v313_v12  ;;  %v496_v12 = vpack.c.bf16 %v426_v9, %v426_v9 }
  0x75   : > { %956 = vmatmul.bf16.gmra.mxu3 %v459_v2  ;;  %994 = vmatmul.bf16.vlgmr.msrb.gmra.mxu0 %v432_v3  ;;  %v488_v2 = vpack.c.bf16 %v418_v61, %v411_v60  ;;  %v302_v3 = vld [vmem:[%s2662_s12 + $0x20] sm:$0xff] }
  0x76   : > { %1044 = vmatpush.bf16.msra.mxu0 %v2676_v1  ;;  %v368_v1 = vld [vmem:[%s2662_s12 + $0x230] sm:$0xff] }
  0x77   : > { %1072 = vmatmul.bf16.gmra.mxu2 %v461_v5  ;;  %1014 = vmatmul.bf16.gmra.mxu1 %v460_v6  ;;  %v466_v21 = vpack.c.bf16 %v375_v11, %v368_v1  ;;  %v309_v5 = vld [vmem:[%s2662_s12 + $0x58] sm:$0xff]  ;;  %v494_v11 = vpack.c.bf16 %v424_v8, %v424_v8 }
  0x78   : > { %v435_v6 = vpack.c.bf16 %v309_v5, %v302_v3  ;;  %v425_v1 = vld [vmem:[%s2662_s12 + $0x3f8] sm:$0xff]  ;;  %v339_v3 = vld [vmem:[%s2662_s12 + $0x148] sm:$0xff] }
  0x79   : > { %v495_v14 = vpack.c.bf16 %v425_v1, %v425_v1  ;;  %v331_v5 = vld [vmem:[%s2662_s12 + $0x108] sm:$0xff] }
  0x7a   : > { %1045 = vmatpush.bf16.msra.mxu0 %v2682_v4  ;;  %v468_v4 = vpack.c.bf16 %v377_v17, %v370_v15  ;;  %v316_v15 = vld [vmem:[%s2662_s12 + $0x90] sm:$0xff]  ;;  %v323_v17 = vld [vmem:[%s2662_s12 + $0xc8] sm:$0xff] }
  0x7b   : > { %v442_v18 = vpack.c.bf16 %v323_v17, %v316_v15 }
  0x7e   : > { %1046 = vmatpush.bf16.msra.mxu0 %v2688_v7  ;;  %v2159_v7 = vld [vmem:[#allocation5 + $0xd0] sm:$0xff] }
  0x7f   : > { %1107 = vmatpush.bf16.msrb.mxu3 %v2159_v7  ;;  %v310_v7 = vld [vmem:[%s2662_s12 + $0x60] sm:$0xff] }
  0x82   : > { %1047 = vmatpush.bf16.msra.mxu0 %v2694_v10  ;;  %v2175_v10 = vld [vmem:[#allocation5 + $0x150] sm:$0xff] }
  0x83   : > { %1223 = vmatpush.bf16.msrb.mxu1 %v2175_v10 }
  0x85   : > { %961 = vmatmul.bf16.gmra.mxu3 %v466_v21  ;;  %999 = vmatmul.bf16.gmra.mxu0 %v439_v23  ;;  %v308_v21 = vld [vmem:[%s2662_s12 + $0x50] sm:$0xff] }
  0x86   : > { %1048 = vmatpush.bf16.msra.mxu0 %v2700_v13  ;;  %v384_v13 = vld [vmem:[%s2662_s12 + $0x2b0] sm:$0xff]  ;;  %v434_v10 = vpack.c.bf16 %v308_v21, %v301_v20  ;;  %v358_v21 = vld [vmem:[%s2662_s12 + $0x1e0] sm:$0xff] }
  0x87   : > { %1077 = vmatmul.bf16.gmra.mxu2 %v468_v4  ;;  %1019 = vmatmul.bf16.gmra.mxu1 %v467_v24  ;;  %v475_v34 = vpack.c.bf16 %v391_v29, %v384_v13  ;;  %v304_v23 = vld [vmem:[%s2662_s12 + $0x30] sm:$0xff]  ;;  %v311_v4 = vld [vmem:[%s2662_s12 + $0x68] sm:$0xff]  ;;  %v330_v13 = vld [vmem:[%s2662_s12 + $0x100] sm:$0xff] }
  0x88   : > { %1224 = vmatpush.bf16.msrb.mxu1 %v2174_v36  ;;  %v303_v24 = vld [vmem:[%s2662_s12 + $0x28] sm:$0xff]  ;;  %v437_v26 = vpack.c.bf16 %v311_v4, %v304_v23  ;;  %v337_v29 = vld [vmem:[%s2662_s12 + $0x138] sm:$0xff] }
  0x89   : > { %v436_v27 = vpack.c.bf16 %v310_v7, %v303_v24  ;;  %v315_v36 = vld [vmem:[%s2662_s12 + $0x88] sm:$0xff]  ;;  %v365_v23 = vld [vmem:[%s2662_s12 + $0x218] sm:$0xff] }
  0x8a   : > { %1049 = vmatpush.bf16.msra.mxu0 %v2706_v16  ;;  %v474_v16 = vpack.c.bf16 %v390_v31, %v383_v30  ;;  %v2809_v30 = vld [vmem:[#allocation7] ss:$0 sm:$0xff]  ;;  %v449_v31 = vpack.c.bf16 %v337_v29, %v330_v13  ;;  %v463_v24 = vpack.c.bf16 %v365_v23, %v358_v21  ;;  %v386_v21 = vld [vmem:[%s2662_s12 + $0x2c0] sm:$0xff] }
  0x8b   : > { %v393_v23 = vld [vmem:[%s2662_s12 + $0x2f8] sm:$0xff] }
  0x8c   : > { %1225 = vmatpush.bf16.msrb.mxu1 %v2173_v54 }
  0x8e   : > { %1050 = vmatpush.bf16.msra.mxu0 %v2712_v19  ;;  %v2172_v19 = vld [vmem:[#allocation5 + $0x138] sm:$0xff] }
  0x92   : > { %1051 = vmatpush.bf16.msra.mxu0 %v2716_v22  ;;  %v2158_v22 = vld [vmem:[#allocation5 + $0xc8] sm:$0xff] }
  0x93   : > { %1108 = vmatpush.bf16.msrb.mxu3 %v2158_v22 }
  0x95   : > { %966 = vmatmul.bf16.gmra.mxu3 %v473_v32  ;;  %1052 = vmatmul.bf16.vlgmr.msra.gmra.mxu0 %v433_v33 }
  0x96   : > { %1160 = vmatpush.bf16.msrb.mxu0 %v2172_v19 }
  0x97   : > { %1082 = vmatmul.bf16.gmra.mxu2 %v475_v34  ;;  %1024 = vmatmul.bf16.gmra.mxu1 %v474_v16 }
  0x98   : > { %1109 = vmatpush.bf16.msrb.mxu3 %v2157_v52  ;;  %v351_v52 = vld [vmem:[%s2662_s12 + $0x1a8] sm:$0xff] }
  0x9a   : > { %1161 = vmatpush.bf16.msrb.mxu0 %v2171_v35 }
  0x9e   : > { %1162 = vmatpush.bf16.msrb.mxu0 %v2170_v37  ;;  %v322_v37 = vld [vmem:[%s2662_s12 + $0xc0] sm:$0xff] }
  0x9f   : > { %v441_v45 = vpack.c.bf16 %v322_v37, %v315_v36  ;;  %v352_v36 = vld [vmem:[%s2662_s12 + $0x1b0] sm:$0xff] }
  0xa2   : > { %1163 = vmatpush.bf16.msrb.mxu0 %v2169_v46 }
  0xa5   : > { %971 = vmatmul.bf16.gmra.mxu3 %v480_v47  ;;  %1057 = vmatmul.bf16.gmra.mxu0 %v440_v48  ;;  %v444_v47 = vpack.c.bf16 %v325_v39, %v318_v38  ;;  %v443_v48 = vpack.c.bf16 %v324_v41, %v317_v40 }
  0xa6   : > { %1164 = vmatpush.bf16.msrb.mxu0 %v2168_v51  ;;  %v344_v51 = vld [vmem:[%s2662_s12 + $0x170] sm:$0xff] }
  0xa7   : > { %1087 = vmatmul.bf16.gmra.mxu2 %v482_v49  ;;  %1029 = vmatmul.bf16.gmra.mxu1 %v481_v50  ;;  %v456_v54 = vpack.c.bf16 %v351_v52, %v344_v51 }
  0xaa   : > { %1165 = vmatpush.bf16.msrb.mxu0 %v2167_v53 }
  0xae   : > { %1166 = vmatpush.bf16.msrb.mxu0 %v2166_v55 }
  0xb2   : > { %1167 = vmatpush.bf16.msrb.mxu0 %v2165_v63  ;;  %v336_v63 = vld [vmem:[%s2662_s12 + $0x130] sm:$0xff] }
  0xb5   : > { %976 = vmatmul.bf16.gmra.mxu3 %v487_v62  ;;  %1168 = vmatmul.bf16.vlgmr.msrb.gmra.mxu0 %v435_v6  ;;  %v329_v62 = vld [vmem:[%s2662_s12 + $0xf8] sm:$0xff]  ;;  %v338_v6 = vld [vmem:[%s2662_s12 + $0x140] sm:$0xff] }
  0xb6   : > { %v450_v15 = vpack.c.bf16 %v338_v6, %v331_v5  ;;  %v359_v5 = vld [vmem:[%s2662_s12 + $0x1e8] sm:$0xff] }
  0xb7   : > { %1092 = vmatmul.bf16.gmra.mxu2 %v489_v0  ;;  %1034 = vmatmul.bf16.gmra.mxu1 %v488_v2  ;;  %v332_v0 = vld [vmem:[%s2662_s12 + $0x110] sm:$0xff] }
  0xc5   : > { %981 = vmatmul.bf16.gmra.mxu3 %v494_v11  ;;  %1173 = vmatmul.bf16.gmra.mxu0 %v442_v18  ;;  %v448_v11 = vpack.c.bf16 %v336_v63, %v329_v62  ;;  %v357_v63 = vld [vmem:[%s2662_s12 + $0x1d8] sm:$0xff] }
  0xc7   : > { %1097 = vmatmul.bf16.gmra.mxu2 %v496_v12  ;;  %1039 = vmatmul.bf16.gmra.mxu1 %v495_v14  ;;  %v451_v14 = vpack.c.bf16 %v339_v3, %v332_v0  ;;  %v364_v0 = vld [vmem:[%s2662_s12 + $0x210] sm:$0xff]  ;;  %v367_v3 = vld [vmem:[%s2662_s12 + $0x228] sm:$0xff] }
  0xd2   : > { %v937_v25 = vpop.f32.mrf.mxu0 }
  0xd3   : > { %v938_v2 = vadd.f32 %v2809_v30, %v937_v25 }
  0xd4   : > { %v1005_v28 = vpop.f32.mrf.mxu1 }
  0xd5   : > { %1110 = vmatmul.bf16.vlgmr.msrb.gmra.mxu3 %v434_v10  ;;  %1178 = vmatmul.bf16.gmra.mxu0 %v449_v31 }
  0xd7   : > { %2121 = vmatmul.msk.bf16.vlgmr.msrb.gmra.mxu2 %vm897_vm0, %v437_v26  ;;  %1226 = vmatmul.bf16.vlgmr.msrb.gmra.mxu1 %v436_v27 }
  0xd8   : > { %v947_v32 = vpop.f32.mrf.mxu3 }
  0xd9   : > { %v948_v33 = vadd.f32 %v2809_v30, %v947_v32  ;;  %v343_v32 = vld [vmem:[%s2662_s12 + $0x168] sm:$0xff] }
  0xda   : > { %v1063_v34 = vpop.f32.mrf.mxu2  ;;  %v939_v16 = vpop.f32.mrf.mxu0 }
  0xdb   : > { %v1006_v19 = vadd.f32 %v1005_v28, %v948_v33  ;;  %v940_v7 = vadd.f32 %v2809_v30, %v939_v16  ;;  %v350_v33 = vld [vmem:[%s2662_s12 + $0x1a0] sm:$0xff] }
  0xdc   : > { %v1007_v22 = vpop.f32.mrf.mxu1  ;;  %v455_v40 = vpack.c.bf16 %v350_v33, %v343_v32  ;;  %v371_v33 = vld [vmem:[%s2662_s12 + $0x248] sm:$0xff] }
  0xdd   : > { %v2813_v35 = vadd.f32 %v1063_v34, %v1006_v19  ;;  %v346_v34 = vld [vmem:[%s2662_s12 + $0x180] sm:$0xff]  ;;  %v353_v19 = vld [vmem:[%s2662_s12 + $0x1b8] sm:$0xff] }
  0xe0   : > { %v949_v42 = vpop.f32.mrf.mxu3 }
  0xe1   : > { %v950_v43 = vadd.f32 %v2809_v30, %v949_v42  ;;  %v458_v42 = vpack.c.bf16 %v353_v19, %v346_v34  ;;  %v378_v34 = vld [vmem:[%s2662_s12 + $0x280] sm:$0xff]  ;;  %v381_v19 = vld [vmem:[%s2662_s12 + $0x298] sm:$0xff] }
  0xe2   : > { %v1065_v44 = vpop.f32.mrf.mxu2  ;;  %v942_v46 = vpop.f32.mrf.mxu0 }
  0xe3   : > { %v1008_v49 = vadd.f32 %v1007_v22, %v950_v43  ;;  %v943_v16 = vadd.f32 %v2809_v30, %v942_v46  ;;  %v345_v22 = vld [vmem:[%s2662_s12 + $0x178] sm:$0xff] }
  0xe4   : > { %v1010_v50 = vpop.f32.mrf.mxu1  ;;  %v457_v43 = vpack.c.bf16 %v352_v36, %v345_v22  ;;  %v373_v22 = vld [vmem:[%s2662_s12 + $0x258] sm:$0xff]  ;;  %v380_v36 = vld [vmem:[%s2662_s12 + $0x290] sm:$0xff] }
  0xe5   : > { %v2824_v53 = vadd.f32 %v1065_v44, %v1008_v49  ;;  %1115 = vmatmul.bf16.gmra.mxu3 %v441_v45  ;;  %1183 = vmatmul.bf16.gmra.mxu0 %v456_v54  ;;  %v379_v49 = vld [vmem:[%s2662_s12 + $0x288] sm:$0xff] }
  0xe7   : > { %2122 = vmatmul.msk.bf16.gmra.mxu2 %vm897_vm0, %v444_v47  ;;  %1231 = vmatmul.bf16.gmra.mxu1 %v443_v48  ;;  %v372_v48 = vld [vmem:[%s2662_s12 + $0x250] sm:$0xff] }
  0xe8   : > { %v952_v55 = vpop.f32.mrf.mxu3  ;;  %v470_v46 = vpack.c.bf16 %v379_v49, %v372_v48  ;;  %v400_v48 = vld [vmem:[%s2662_s12 + $0x330] sm:$0xff]  ;;  %v407_v49 = vld [vmem:[%s2662_s12 + $0x368] sm:$0xff] }
  0xe9   : > { %v953_v56 = vadd.f32 %v2809_v30, %v952_v55 }
  0xea   : > { %v1068_v57 = vpop.f32.mrf.mxu2  ;;  %v944_v58 = vpop.f32.mrf.mxu0 }
  0xeb   : > { %v1011_v59 = vadd.f32 %v1010_v50, %v953_v56  ;;  %v945_v51 = vadd.f32 %v2809_v30, %v944_v58  ;;  %v366_v58 = vld [vmem:[%s2662_s12 + $0x220] sm:$0xff] }
  0xec   : > { %v1012_v60 = vpop.f32.mrf.mxu1 }
  0xed   : > { %v2828_v61 = vadd.f32 %v1068_v57, %v1011_v59 }
  0xf0   : > { %v954_v8 = vpop.f32.mrf.mxu3 }
  0xf1   : > { %v955_v9 = vadd.f32 %v2809_v30, %v954_v8 }
  0xf2   : > { %v1070_v1 = vpop.f32.mrf.mxu2  ;;  %v995_v12 = vpop.f32.mrf.mxu0 }
  0xf3   : > { %v1013_v17 = vadd.f32 %v1012_v60, %v955_v9  ;;  %v2838_v18 = vadd.f32 %v995_v12, %v938_v2  ;;  %v360_v2 = vld [vmem:[%s2662_s12 + $0x1f0] sm:$0xff] }
  0xf4   : > { %v1015_v20 = vpop.f32.mrf.mxu1  ;;  %v465_v12 = vpack.c.bf16 %v367_v3, %v360_v2  ;;  %v392_v2 = vld [vmem:[%s2662_s12 + $0x2f0] sm:$0xff] }
  0xf5   : > { %v2842_v4 = vadd.f32 %v1070_v1, %v1013_v17  ;;  %1120 = vmatmul.bf16.gmra.mxu3 %v448_v11  ;;  %1188 = vmatmul.bf16.gmra.mxu0 %v463_v24  ;;  %v462_v1 = vpack.c.bf16 %v364_v0, %v357_v63  ;;  %v385_v0 = vld [vmem:[%s2662_s12 + $0x2b8] sm:$0xff]  ;;  %v388_v3 = vld [vmem:[%s2662_s12 + $0x2d0] sm:$0xff] }
  0xf7   : > { %2123 = vmatmul.msk.bf16.gmra.mxu2 %vm897_vm0, %v451_v14  ;;  %1236 = vmatmul.bf16.gmra.mxu1 %v450_v15  ;;  %v464_v14 = vpack.c.bf16 %v366_v58, %v359_v5  ;;  %v395_v5 = vld [vmem:[%s2662_s12 + $0x308] sm:$0xff] }
  0xf8   : > { %v957_v10 = vpop.f32.mrf.mxu3  ;;  %v387_v58 = vld [vmem:[%s2662_s12 + $0x2c8] sm:$0xff] }
  0xf9   : > { %v958_v25 = vadd.f32 %v2809_v30, %v957_v10 }
  0xfa   : > { %v1073_v26 = vpop.f32.mrf.mxu2  ;;  %v997_v27 = vpop.f32.mrf.mxu0 }
  0xfb   : > { %v1016_v28 = vadd.f32 %v1015_v20, %v958_v25  ;;  %v2847_v13 = vadd.f32 %v997_v27, %v940_v7  ;;  %v477_v7 = vpack.c.bf16 %v393_v23, %v386_v21  ;;  %v421_v23 = vld [vmem:[%s2662_s12 + $0x3d8] sm:$0xff] }
  0xfc   : > { %v1017_v29 = vpop.f32.mrf.mxu1 }
  0xfd   : > { %v2849_v31 = vadd.f32 %v1073_v26, %v1016_v28 }
 0x100   : > { %v959_v37 = vpop.f32.mrf.mxu3 }
 0x101   : > { %v960_v38 = vadd.f32 %v2809_v30, %v959_v37 }
 0x102   : > { %v1075_v39 = vpop.f32.mrf.mxu2  ;;  %v1000_v41 = vpop.f32.mrf.mxu0 }
 0x103   : > { %v1018_v44 = vadd.f32 %v1017_v29, %v960_v38  ;;  %v2859_v45 = vadd.f32 %v1000_v41, %v943_v16  ;;  %v374_v16 = vld [vmem:[%s2662_s12 + $0x260] sm:$0xff] }
 0x104   : > { %v1020_v47 = vpop.f32.mrf.mxu1 }
 0x105   : > { %v2863_v50 = vadd.f32 %v1075_v39, %v1018_v44  ;;  %1125 = vmatmul.bf16.gmra.mxu3 %v455_v40  ;;  %1193 = vmatmul.bf16.gmra.mxu0 %v470_v46  ;;  %v469_v40 = vpack.c.bf16 %v378_v34, %v371_v33 }
 0x107   : > { %2124 = vmatmul.msk.bf16.gmra.mxu2 %vm897_vm0, %v458_v42  ;;  %1241 = vmatmul.bf16.gmra.mxu1 %v457_v43  ;;  %v472_v42 = vpack.c.bf16 %v381_v19, %v374_v16  ;;  %v399_v16 = vld [vmem:[%s2662_s12 + $0x328] sm:$0xff]  ;;  %v406_v19 = vld [vmem:[%s2662_s12 + $0x360] sm:$0xff] }
 0x108   : > { %v962_v52 = vpop.f32.mrf.mxu3 }
 0x109   : > { %v963_v54 = vadd.f32 %v2809_v30, %v962_v52 }
 0x10a   : > { %v1078_v55 = vpop.f32.mrf.mxu2  ;;  %v1002_v56 = vpop.f32.mrf.mxu0 }
 0x10b   : > { %v1021_v57 = vadd.f32 %v1020_v47, %v963_v54  ;;  %v2868_v59 = vadd.f32 %v1002_v56, %v945_v51  ;;  %v484_v51 = vpack.c.bf16 %v407_v49, %v400_v48  ;;  %v428_v49 = vld [vmem:[%s2662_s12 + $0x410] sm:$0xff] }
 0x10c   : > { %v1022_v60 = vpop.f32.mrf.mxu1 }
 0x10d   : > { %v2870_v62 = vadd.f32 %v1078_v55, %v1021_v57 }
 0x110   : > { %v964_v6 = vpop.f32.mrf.mxu3 }
 0x111   : > { %v965_v8 = vadd.f32 %v2809_v30, %v964_v6  ;;  %v394_v6 = vld [vmem:[%s2662_s12 + $0x300] sm:$0xff] }
 0x112   : > { %v1080_v9 = vpop.f32.mrf.mxu2  ;;  %v1053_v11 = vpop.f32.mrf.mxu0 }
 0x113   : > { %v1023_v15 = vadd.f32 %v1022_v60, %v965_v8  ;;  %v2880_v17 = vadd.f32 %v1053_v11, %v2838_v18  ;;  %v476_v11 = vpack.c.bf16 %v392_v2, %v385_v0 }
 0x114   : > { %v1025_v20 = vpop.f32.mrf.mxu1 }
 0x115   : > { %v2884_v24 = vadd.f32 %v1080_v9, %v1023_v15  ;;  %1130 = vmatmul.bf16.gmra.mxu3 %v462_v1  ;;  %1198 = vmatmul.bf16.gmra.mxu0 %v477_v7 }
 0x117   : > { %2125 = vmatmul.msk.bf16.gmra.mxu2 %vm897_vm0, %v465_v12  ;;  %1246 = vmatmul.bf16.gmra.mxu1 %v464_v14  ;;  %v479_v12 = vpack.c.bf16 %v395_v5, %v388_v3  ;;  %v478_v14 = vpack.c.bf16 %v394_v6, %v387_v58  ;;  %v413_v5 = vld [vmem:[%s2662_s12 + $0x398] sm:$0xff]  ;;  %v420_v58 = vld [vmem:[%s2662_s12 + $0x3d0] sm:$0xff] }
 0x118   : > { %v967_v10 = vpop.f32.mrf.mxu3  ;;  %v416_v6 = vld [vmem:[%s2662_s12 + $0x3b0] sm:$0xff] }
 0x119   : > { %v968_v18 = vadd.f32 %v2809_v30, %v967_v10 }
 0x11a   : > { %v1083_v25 = vpop.f32.mrf.mxu2  ;;  %v1055_v26 = vpop.f32.mrf.mxu0 }
 0x11b   : > { %v1026_v27 = vadd.f32 %v1025_v20, %v968_v18  ;;  %v2889_v28 = vadd.f32 %v1055_v26, %v2847_v13  ;;  %v471_v13 = vpack.c.bf16 %v380_v36, %v373_v22  ;;  %v414_v20 = vld [vmem:[%s2662_s12 + $0x3a0] sm:$0xff]  ;;  %v409_v36 = vld [vmem:[%s2662_s12 + $0x378] sm:$0xff] }
 0x11c   : > { %v1027_v29 = vpop.f32.mrf.mxu1  ;;  %v491_v10 = vpack.c.bf16 %v421_v23, %v414_v20  ;;  %v402_v22 = vld [vmem:[%s2662_s12 + $0x340] sm:$0xff] }
 0x11d   : > { %v2891_v32 = vadd.f32 %v1083_v25, %v1026_v27 }
 0x120   : > { %v969_v37 = vpop.f32.mrf.mxu3 }
 0x121   : > { %v970_v38 = vadd.f32 %v2809_v30, %v969_v37  ;;  %v401_v37 = vld [vmem:[%s2662_s12 + $0x338] sm:$0xff] }
 0x122   : > { %v1085_v39 = vpop.f32.mrf.mxu2  ;;  %v1058_v41 = vpop.f32.mrf.mxu0 }
 0x123   : > { %v1028_v43 = vadd.f32 %v1027_v29, %v970_v38  ;;  %v2901_v44 = vadd.f32 %v1058_v41, %v2859_v45  ;;  %v408_v38 = vld [vmem:[%s2662_s12 + $0x370] sm:$0xff] }
 0x124   : > { %v1030_v47 = vpop.f32.mrf.mxu1 }
 0x125   : > { %v2905_v46 = vadd.f32 %v1085_v39, %v1028_v43  ;;  %1135 = vmatmul.bf16.gmra.mxu3 %v469_v40  ;;  %1203 = vmatmul.bf16.gmra.mxu0 %v484_v51  ;;  %v485_v43 = vpack.c.bf16 %v408_v38, %v401_v37 }
 0x127   : > { %2126 = vmatmul.msk.bf16.gmra.mxu2 %vm897_vm0, %v472_v42  ;;  %1251 = vmatmul.bf16.gmra.mxu1 %v471_v13  ;;  %v483_v42 = vpack.c.bf16 %v406_v19, %v399_v16  ;;  %v486_v13 = vpack.c.bf16 %v409_v36, %v402_v22  ;;  %v427_v16 = vld [vmem:[%s2662_s12 + $0x408] sm:$0xff]  ;;  %v430_v22 = vld [vmem:[%s2662_s12 + $0x420] sm:$0xff]  ;;  %v429_v36 = vld [vmem:[%s2662_s12 + $0x418] sm:$0xff] }
 0x128   : > { %v972_v52 = vpop.f32.mrf.mxu3 }
 0x129   : > { %v973_v45 = vadd.f32 %v2809_v30, %v972_v52  ;;  %v498_v52 = vpack.c.bf16 %v428_v49, %v428_v49 }
 0x12a   : > { %v1088_v54 = vpop.f32.mrf.mxu2  ;;  %v1060_v55 = vpop.f32.mrf.mxu0 }
 0x12b   : > { %v1031_v56 = vadd.f32 %v1030_v47, %v973_v45  ;;  %v2910_v57 = vadd.f32 %v1060_v55, %v2868_v59 }
 0x12c   : > { %v1032_v60 = vpop.f32.mrf.mxu1 }
 0x12d   : > { %v2912_v63 = vadd.f32 %v1088_v54, %v1031_v56 }
 0x130   : > { %v974_v8 = vpop.f32.mrf.mxu3 }
 0x131   : > { %v975_v9 = vadd.f32 %v2809_v30, %v974_v8  ;;  %v423_v8 = vld [vmem:[%s2662_s12 + $0x3e8] sm:$0xff] }
 0x132   : > { %v1090_v1 = vpop.f32.mrf.mxu2  ;;  %v2922_v21 = vpop.f32.mrf.mxu0 }
 0x133   : > { %v1033_v59 = vadd.f32 %v1032_v60, %v975_v9  ;;  %v415_v9 = vld [vmem:[%s2662_s12 + $0x3a8] sm:$0xff] }
 0x134   : > { %v1035_v15 = vpop.f32.mrf.mxu1 }
 0x135   : > { %v2925_v7 = vadd.f32 %v1090_v1, %v1033_v59  ;;  %1140 = vmatmul.bf16.gmra.mxu3 %v476_v11  ;;  %1208 = vmatmul.bf16.gmra.mxu0 %v491_v10  ;;  %v422_v1 = vld [vmem:[%s2662_s12 + $0x3e0] sm:$0xff]  ;;  %v493_v59 = vpack.c.bf16 %v423_v8, %v416_v6 }
 0x137   : > { %2127 = vmatmul.msk.bf16.gmra.mxu2 %vm897_vm0, %v479_v12  ;;  %1256 = vmatmul.bf16.gmra.mxu1 %v478_v14  ;;  %v490_v14 = vpack.c.bf16 %v420_v58, %v413_v5 }
 0x138   : > { %v977_v18 = vpop.f32.mrf.mxu3 }
 0x139   : > { %v978_v25 = vadd.f32 %v2809_v30, %v977_v18 }
 0x13a   : > { %v1093_v26 = vpop.f32.mrf.mxu2  ;;  %v2929_v33 = vpop.f32.mrf.mxu0 }
 0x13b   : > { %v1036_v27 = vadd.f32 %v1035_v15, %v978_v25 }
 0x13c   : > { %v1037_v29 = vpop.f32.mrf.mxu1 }
 0x13d   : > { %v2931_v34 = vadd.f32 %v1093_v26, %v1036_v27 }
 0x140   : > { %v979_v39 = vpop.f32.mrf.mxu3 }
 0x141   : > { %v980_v40 = vadd.f32 %v2809_v30, %v979_v39 }
 0x142   : > { %v1095_v41 = vpop.f32.mrf.mxu2  ;;  %v2941_v51 = vpop.f32.mrf.mxu0 }
 0x143   : > { %v1038_v47 = vadd.f32 %v1037_v29, %v980_v40 }
 0x144   : > { %v1040_v48 = vpop.f32.mrf.mxu1 }
 0x145   : > { %v2943_v45 = vadd.f32 %v1095_v41, %v1038_v47  ;;  %1145 = vmatmul.bf16.gmra.mxu3 %v483_v42  ;;  %1213 = vmatmul.bf16.gmra.mxu0 %v498_v52  ;;  %v497_v41 = vpack.c.bf16 %v427_v16, %v427_v16  ;;  %v2968_v42 = vld [vmem:[#allocation8] ss:$0 sm:$0xff] }
 0x147   : > { %2128 = vmatmul.msk.bf16.gmra.mxu2 %vm897_vm0, %v486_v13  ;;  %1261 = vmatmul.bf16.gmra.mxu1 %v485_v43  ;;  %v499_v13 = vpack.c.bf16 %v429_v36, %v429_v36 }
 0x148   : > { %v982_v54 = vpop.f32.mrf.mxu3 }
 0x149   : > { %v983_v55 = vadd.f32 %v2809_v30, %v982_v54  ;;  %v492_v30 = vpack.c.bf16 %v422_v1, %v415_v9 }
 0x14a   : > { %v1098_v56 = vpop.f32.mrf.mxu2  ;;  %v2947_v2 = vpop.f32.mrf.mxu0 }
 0x14b   : > { %v1041_v60 = vadd.f32 %v1040_v48, %v983_v55 }
 0x14c   : > { %v1042_v0 = vpop.f32.mrf.mxu1 }
 0x14d   : > { %v2949_v3 = vadd.f32 %v1098_v56, %v1041_v60 }
 0x150   : > { %v984_v11 = vpop.f32.mrf.mxu3 }
 0x152   : > { %v1100_v12 = vpop.f32.mrf.mxu2  ;;  %v2957_v20 = vpop.f32.mrf.mxu0 }
 0x154   : > { %v1227_v15 = vpop.f32.mrf.mxu1 }
 0x155   : > { %1150 = vmatmul.bf16.gmra.mxu3 %v490_v14 }
 0x157   : > { %2129 = vmatmul.msk.bf16.gmra.mxu2 %vm897_vm0, %v493_v59  ;;  %1266 = vmatmul.bf16.gmra.mxu1 %v492_v30 }
 0x158   : > { %v1111_v23 = vpop.f32.mrf.mxu3 }
 0x159   : > { %v1112_v10 = vadd.f32 %v1111_v23, %v2880_v17  ;;  %v500_v17 = vpack.c.bf16 %v430_v22, %v430_v22 }
 0x15a   : > { %v1285_v18 = vpop.f32.mrf.mxu2  ;;  %v2962_v27 = vpop.f32.mrf.mxu0 }
 0x15b   : > { %v1170_v25 = vadd.f32 %v2922_v21, %v1112_v10 }
 0x15c   : > { %v1229_v26 = vpop.f32.mrf.mxu1 }
 0x15d   : > { %v1228_v29 = vadd.f32 %v1227_v15, %v1170_v25 }
 0x15f   : > { %v1286_v19 = vadd.f32 %v1285_v18, %v1228_v29 }
 0x160   : > { %v1113_v37 = vpop.f32.mrf.mxu3 }
 0x161   : > { %v1334_v38 = vmul.f32 0.1, %v1286_v19  ;;  %v1114_v39 = vadd.f32 %v1113_v37, %v2889_v28 }
 0x162   : > { %v1287_v40 = vpop.f32.mrf.mxu2  ;;  %v1184_v48 = vpop.f32.mrf.mxu0 }
 0x163   : > { %v1172_v21 = vadd.f32 %v2929_v33, %v1114_v39  ;;  %v1353_v47 = vmax.f32 %v1286_v19, %v1334_v38 }
 0x164   : > { %v1232_v43 = vpop.f32.mrf.mxu1 }
 0x165   : > { %v1230_v49 = vadd.f32 %v1229_v26, %v1172_v21  ;;  %1155 = vmatmul.bf16.gmra.mxu3 %v497_v41  ;;  %v1376_v52 = vmul.f32 %v2968_v42, %v1353_v47 }
 0x167   : > { %2130 = vmatmul.msk.bf16.gmra.mxu2 %vm897_vm0, %v500_v17  ;;  %1271 = vmatmul.bf16.gmra.mxu1 %v499_v13  ;;  %v1288_v54 = vadd.f32 %v1287_v40, %v1230_v49 }
 0x168   : > { %1395 = vadd.xlane.f32.xlu0 %v1376_v52  ;;  %v1116_v28 = vpop.f32.mrf.mxu3 }
 0x169   : > { %v1335_v55 = vmul.f32 0.1, %v1288_v54  ;;  %v1117_v56 = vadd.f32 %v1116_v28, %v2901_v44 }
 0x16a   : > { %v1290_v60 = vpop.f32.mrf.mxu2  ;;  %v1186_v58 = vpop.f32.mrf.mxu0 }
 0x16b   : > { %v1354_v0 = vmax.f32 %v1288_v54, %v1335_v55  ;;  %v1175_v33 = vadd.f32 %v2941_v51, %v1117_v56 }
 0x16c   : > { %v1234_v5 = vpop.f32.mrf.mxu1 }
 0x16d   : > { %v1233_v6 = vadd.f32 %v1232_v43, %v1175_v33  ;;  %v1377_v8 = vmul.f32 %v2968_v42, %v1354_v0 }
 0x16f   : > { %v1291_v9 = vadd.f32 %v1290_v60, %v1233_v6 }
 0x170   : > { %1397 = vadd.xlane.f32.xlu0 %v1377_v8  ;;  %v1118_v1 = vpop.f32.mrf.mxu3 }
 0x171   : > { %v1336_v11 = vmul.f32 0.1, %v1291_v9  ;;  %v1119_v12 = vadd.f32 %v1118_v1, %v2910_v57 }
 0x172   : > { %v1292_v14 = vpop.f32.mrf.mxu2  ;;  %v1189_v15 = vpop.f32.mrf.mxu0 }
 0x173   : > { %v1177_v59 = vadd.f32 %v2947_v2, %v1119_v12  ;;  %v1355_v44 = vmax.f32 %v1291_v9, %v1336_v11 }
 0x174   : > { %v1237_v30 = vpop.f32.mrf.mxu1 }
 0x175   : > { %v1235_v23 = vadd.f32 %v1234_v5, %v1177_v59  ;;  %v1378_v51 = vmul.f32 %v2968_v42, %v1355_v44 }
 0x177   : > { %v1293_v10 = vadd.f32 %v1292_v14, %v1235_v23  ;;  %1399 = vadd.xlane.f32.xlu1 %v1378_v51 }
 0x178   : > { %v1121_v18 = vpop.f32.mrf.mxu3 }
 0x179   : > { %v1337_v25 = vmul.f32 0.1, %v1293_v10  ;;  %v1122_v26 = vadd.f32 %v1121_v18, %v2813_v35 }
 0x17a   : > { %v1295_v29 = vpop.f32.mrf.mxu2  ;;  %v1191_v22 = vpop.f32.mrf.mxu0 }
 0x17b   : > { %v1356_v16 = vmax.f32 %v1293_v10, %v1337_v25  ;;  %v1180_v19 = vadd.f32 %v2957_v20, %v1122_v26 }
 0x17c   : > { %v1239_v57 = vpop.f32.mrf.mxu1 }
 0x17d   : > { %v1238_v36 = vadd.f32 %v1237_v30, %v1180_v19  ;;  %v1379_v2 = vmul.f32 %v2968_v42, %v1356_v16 }
 0x17f   : > { %v1296_v37 = vadd.f32 %v1295_v29, %v1238_v36  ;;  %1401 = vadd.xlane.f32.xlu1 %v1379_v2 }
 0x180   : > { %v1123_v38 = vpop.f32.mrf.mxu3 }
 0x181   : > { %v1338_v39 = vmul.f32 0.1, %v1296_v37  ;;  %v1124_v40 = vadd.f32 %v1123_v38, %v2824_v53 }
 0x182   : > { %v1297_v41 = vpop.f32.mrf.mxu2  ;;  %v1194_v21 = vpop.f32.mrf.mxu0 }
 0x183   : > { %v1182_v17 = vadd.f32 %v2962_v27, %v1124_v40  ;;  %v1357_v35 = vmax.f32 %v1296_v37, %v1338_v39 }
 0x184   : > { %v1242_v13 = vpop.f32.mrf.mxu1 }
 0x185   : > { %v1240_v43 = vadd.f32 %v1239_v57, %v1182_v17  ;;  %v1380_v20 = vmul.f32 %v2968_v42, %v1357_v35 }
 0x187   : > { %v1298_v47 = vadd.f32 %v1297_v41, %v1240_v43  ;;  %1403 = vadd.xlane.f32.xlu2 %v1380_v20 }
 0x188   : > { %v1126_v49 = vpop.f32.mrf.mxu3 }
 0x189   : > { %v1339_v52 = vmul.f32 0.1, %v1298_v47  ;;  %v1127_v54 = vadd.f32 %v1126_v49, %v2828_v61 }
 0x18a   : > { %v1300_v28 = vpop.f32.mrf.mxu2  ;;  %v1196_v53 = vpop.f32.mrf.mxu0 }
 0x18b   : > { %v1358_v55 = vmax.f32 %v1298_v47, %v1339_v52  ;;  %v1185_v56 = vadd.f32 %v1184_v48, %v1127_v54 }
 0x18c   : > { %v1244_v60 = vpop.f32.mrf.mxu1 }
 0x18d   : > { %v1243_v0 = vadd.f32 %v1242_v13, %v1185_v56  ;;  %v1381_v27 = vmul.f32 %v2968_v42, %v1358_v55 }
 0x18f   : > { %v1301_v33 = vadd.f32 %v1300_v28, %v1243_v0  ;;  %1405 = vadd.xlane.f32.xlu2 %v1381_v27 }
 0x190   : > { %v1128_v5 = vpop.f32.mrf.mxu3 }
 0x191   : > { %v1340_v6 = vmul.f32 0.1, %v1301_v33  ;;  %v1129_v8 = vadd.f32 %v1128_v5, %v2842_v4 }
 0x192   : > { %v1302_v9 = vpop.f32.mrf.mxu2  ;;  %v1199_v14 = vpop.f32.mrf.mxu0 }
 0x193   : > { %v1359_v1 = vmax.f32 %v1301_v33, %v1340_v6  ;;  %v1187_v11 = vadd.f32 %v1186_v58, %v1129_v8 }
 0x194   : > { %v1247_v12 = vpop.f32.mrf.mxu1 }
 0x195   : > { %v1245_v61 = vadd.f32 %v1244_v60, %v1187_v11  ;;  %v1382_v59 = vmul.f32 %v2968_v42, %v1359_v1 }
 0x197   : > { %v1303_v48 = vadd.f32 %v1302_v9, %v1245_v61  ;;  %1407 = vadd.xlane.f32.xlu0 %v1382_v59 }
 0x198   : > { %v1131_v30 = vpop.f32.mrf.mxu3 }
 0x199   : > { %v1341_v44 = vmul.f32 0.1, %v1303_v48  ;;  %v1132_v23 = vadd.f32 %v1131_v30, %v2849_v31 }
 0x19a   : > { %v1305_v51 = vpop.f32.mrf.mxu2  ;;  %v1201_v26 = vpop.f32.mrf.mxu0 }
 0x19b   : > { %v1360_v10 = vmax.f32 %v1303_v48, %v1341_v44  ;;  %v1190_v18 = vadd.f32 %v1189_v15, %v1132_v23 }
 0x19c   : > { %v1249_v25 = vpop.f32.mrf.mxu1 }
 0x19d   : > { %v1248_v4 = vadd.f32 %v1247_v12, %v1190_v18  ;;  %v1383_v29 = vmul.f32 %v2968_v42, %v1360_v10 }
 0x19f   : > { %v1306_v58 = vadd.f32 %v1305_v51, %v1248_v4  ;;  %1409 = vadd.xlane.f32.xlu1 %v1383_v29 }
 0x1a0   : > { %v1133_v16 = vpop.f32.mrf.mxu3 }
 0x1a1   : > { %v1342_v19 = vmul.f32 0.1, %v1306_v58  ;;  %v1134_v57 = vadd.f32 %v1133_v16, %v2863_v50 }
 0x1a2   : > { %v1307_v36 = vpop.f32.mrf.mxu2  ;;  %v1204_v39 = vpop.f32.mrf.mxu0 }
 0x1a3   : > { %v1361_v2 = vmax.f32 %v1306_v58, %v1342_v19  ;;  %v1192_v37 = vadd.f32 %v1191_v22, %v1134_v57 }
 0x1a4   : > { %v1252_v38 = vpop.f32.mrf.mxu1 }
 0x1a5   : > { %v1250_v31 = vadd.f32 %v1249_v25, %v1192_v37  ;;  %v1384_v40 = vmul.f32 %v2968_v42, %v1361_v2 }
 0x1a7   : > { %v1308_v15 = vadd.f32 %v1307_v36, %v1250_v31  ;;  %1411 = vadd.xlane.f32.xlu2 %v1384_v40 }
 0x1a8   : > { %v1136_v41 = vpop.f32.mrf.mxu3 }
 0x1a9   : > { %v1343_v17 = vmul.f32 0.1, %v1308_v15  ;;  %v1137_v13 = vadd.f32 %v1136_v41, %v2870_v62 }
 0x1aa   : > { %v1310_v35 = vpop.f32.mrf.mxu2  ;;  %v1206_v49 = vpop.f32.mrf.mxu0 }
 0x1ab   : > { %v1362_v43 = vmax.f32 %v1308_v15, %v1343_v17  ;;  %v1195_v20 = vadd.f32 %v1194_v21, %v1137_v13 }
 0x1ac   : > { %v1254_v47 = vpop.f32.mrf.mxu1 }
 0x1ad   : > { %v1253_v50 = vadd.f32 %v1252_v38, %v1195_v20  ;;  %v1385_v52 = vmul.f32 %v2968_v42, %v1362_v43 }
 0x1af   : > { %v1311_v22 = vadd.f32 %v1310_v35, %v1253_v50  ;;  %1413 = vadd.xlane.f32.xlu0 %v1385_v52  ;;  %v3009_v50 = vstv %s1433_s24 }
 0x1b0   : > { %v1138_v54 = vpop.f32.mrf.mxu3 }
 0x1b1   : > { %v1344_v28 = vmul.f32 0.1, %v1311_v22  ;;  %v1139_v55 = vadd.f32 %v1138_v54, %v2884_v24 }
 0x1b2   : > { %v1312_v56 = vpop.f32.mrf.mxu2  ;;  %v1209_v33 = vpop.f32.mrf.mxu0 }
 0x1b3   : > { %v1363_v60 = vmax.f32 %v1311_v22, %v1344_v28  ;;  %v1197_v0 = vadd.f32 %v1196_v53, %v1139_v55 }
 0x1b4   : > { %v1257_v27 = vpop.f32.mrf.mxu1 }
 0x1b5   : > { %v1255_v62 = vadd.f32 %v1254_v47, %v1197_v0  ;;  %v1386_v5 = vmul.f32 %v2968_v42, %v1363_v60 }
 0x1b7   : > { %v1313_v21 = vadd.f32 %v1312_v56, %v1255_v62  ;;  %1415 = vadd.xlane.f32.xlu1 %v1386_v5 }
 0x1b8   : > { %v1141_v6 = vpop.f32.mrf.mxu3 }
 0x1b9   : > { %v1345_v8 = vmul.f32 0.1, %v1313_v21  ;;  %v1142_v9 = vadd.f32 %v1141_v6, %v2891_v32 }
 0x1ba   : > { %v1315_v1 = vpop.f32.mrf.mxu2  ;;  %v2998_v59 = vpop.f32.mrf.mxu0 }
 0x1bb   : > { %v1364_v11 = vmax.f32 %v1313_v21, %v1345_v8  ;;  %v1200_v12 = vadd.f32 %v1199_v14, %v1142_v9 }
 0x1bc   : > { %v1259_v61 = vpop.f32.mrf.mxu1 }
 0x1bd   : > { %v1258_v24 = vadd.f32 %v1257_v27, %v1200_v12  ;;  %v1387_v53 = vmul.f32 %v2968_v42, %v1364_v11 }
 0x1bf   : > { %v1316_v48 = vadd.f32 %v1315_v1, %v1258_v24  ;;  %1417 = vadd.xlane.f32.xlu2 %v1387_v53 }
 0x1c0   : > { %v1143_v30 = vpop.f32.mrf.mxu3 }
 0x1c1   : > { %v1346_v44 = vmul.f32 0.1, %v1316_v48  ;;  %v1144_v23 = vadd.f32 %v1143_v30, %v2905_v46 }
 0x1c2   : > { %v1317_v51 = vpop.f32.mrf.mxu2  ;;  %v3002_v32 = vpop.f32.mrf.mxu0 }
 0x1c3   : > { %v1365_v10 = vmax.f32 %v1316_v48, %v1346_v44  ;;  %v1202_v18 = vadd.f32 %v1201_v26, %v1144_v23 }
 0x1c4   : > { %v1262_v25 = vpop.f32.mrf.mxu1 }
 0x1c5   : > { %v1260_v4 = vadd.f32 %v1259_v61, %v1202_v18  ;;  %v1388_v14 = vmul.f32 %v2968_v42, %v1365_v10 }
 0x1c7   : > { %v1318_v29 = vadd.f32 %v1317_v51, %v1260_v4  ;;  %1419 = vadd.xlane.f32.xlu0 %v1388_v14 }
 0x1c8   : > { %v1146_v58 = vpop.f32.mrf.mxu3 }
 0x1c9   : > { %v1347_v16 = vmul.f32 0.1, %v1318_v29  ;;  %v1147_v19 = vadd.f32 %v1146_v58, %v2912_v63 }
 0x1ca   : > { %v1320_v57 = vpop.f32.mrf.mxu2  ;;  %v1216_v46 = vpop.f32.mrf.mxu0 }
 0x1cb   : > { %v1366_v36 = vmax.f32 %v1318_v29, %v1347_v16  ;;  %v1205_v2 = vadd.f32 %v1204_v39, %v1147_v19 }
 0x1cc   : > { %v1264_v37 = vpop.f32.mrf.mxu1 }
 0x1cd   : > { %v1263_v38 = vadd.f32 %v1262_v25, %v1205_v2  ;;  %v1389_v26 = vmul.f32 %v2968_v42, %v1366_v36 }
 0x1cf   : > { %v1321_v31 = vadd.f32 %v1320_v57, %v1263_v38  ;;  %1421 = vadd.xlane.f32.xlu1 %v1389_v26 }
 0x1d0   : > { %v1148_v40 = vpop.f32.mrf.mxu3 }
 0x1d1   : > { %v1348_v15 = vmul.f32 0.1, %v1321_v31  ;;  %v1149_v41 = vadd.f32 %v1148_v40, %v2925_v7 }
 0x1d2   : > { %v1322_v17 = vpop.f32.mrf.mxu2 }
 0x1d3   : > { %v1367_v13 = vmax.f32 %v1321_v31, %v1348_v15  ;;  %v1207_v35 = vadd.f32 %v1206_v49, %v1149_v41 }
 0x1d4   : > { %v1267_v43 = vpop.f32.mrf.mxu1 }
 0x1d5   : > { %v1265_v63 = vadd.f32 %v1264_v37, %v1207_v35  ;;  %v1390_v20 = vmul.f32 %v2968_v42, %v1367_v13 }
 0x1d7   : > { %v1323_v39 = vadd.f32 %v1322_v17, %v1265_v63  ;;  %1423 = vadd.xlane.f32.xlu2 %v1390_v20 }
 0x1d8   : > { %v1151_v47 = vpop.f32.mrf.mxu3 }
 0x1d9   : > { %v1349_v52 = vmul.f32 0.1, %v1323_v39  ;;  %v1152_v22 = vadd.f32 %v1151_v47, %v2931_v34 }
 0x1da   : > { %v1325_v54 = vpop.f32.mrf.mxu2 }
 0x1db   : > { %v1396_v28 = vpop.xlane.xlu0 %1395  ;;  %v1368_v55 = vmax.f32 %v1323_v39, %v1349_v52  ;;  %v1210_v56 = vadd.f32 %v1209_v33, %v1152_v22 }
 0x1dc   : > { %v1435_v7 = vadd.f32 %v3009_v50, %v1396_v28  ;;  %v1269_v60 = vpop.f32.mrf.mxu1 }
 0x1dd   : > { %v1268_v49 = vadd.f32 %v1267_v43, %v1210_v56  ;;  %v1391_v27 = vmul.f32 %v2968_v42, %v1368_v55 }
 0x1de   : > { %v1454_v0 = vsub.f32 0.0, %v1435_v7 }
 0x1df   : > { %v1326_v62 = vadd.f32 %v1325_v54, %v1268_v49  ;;  %1425 = vadd.xlane.f32.xlu0 %v1391_v27 }
 0x1e0   : > { %v1473_v5 = vmul.f32 1.442695, %v1454_v0  ;;  %v1153_v21 = vpop.f32.mrf.mxu3 }
 0x1e1   : > { %v1350_v6 = vmul.f32 0.1, %v1326_v62  ;;  %v1154_v8 = vadd.f32 %v1153_v21, %v2943_v45 }
 0x1e2   : > { %2286 = vpow2.f32 %v1473_v5  ;;  %v1327_v34 = vpop.f32.mrf.mxu2 }
 0x1e3   : > { %v1398_v9 = vpop.xlane.xlu0 %1397  ;;  %v1369_v1 = vmax.f32 %v1326_v62, %v1350_v6  ;;  %v1212_v33 = vadd.f32 %v2998_v59, %v1154_v8 }
 0x1e4   : > { %v1436_v11 = vadd.f32 %v3009_v50, %v1398_v9  ;;  %v1272_v12 = vpop.f32.mrf.mxu1 }
 0x1e5   : > { %v1270_v61 = vadd.f32 %v1269_v60, %v1212_v33  ;;  %v1392_v53 = vmul.f32 %v2968_v42, %v1369_v1 }
 0x1e6   : > { %v1455_v24 = vsub.f32 0.0, %v1436_v11 }
 0x1e7   : > { %v1328_v30 = vadd.f32 %v1327_v34, %v1270_v61  ;;  %1427 = vadd.xlane.f32.xlu1 %v1392_v53 }
 0x1e8   : > { %v2287_v48 = vpop.eup %2286  ;;  %v1475_v44 = vmul.f32 1.442695, %v1455_v24  ;;  %v1156_v51 = vpop.f32.mrf.mxu3 }
 0x1e9   : > { %v1511_v23 = vadd.f32 1.0, %v2287_v48  ;;  %v1351_v45 = vmul.f32 0.1, %v1328_v30  ;;  %v1157_v10 = vadd.f32 %v1156_v51, %v2949_v3 }
 0x1ea   : > { %2288 = vpow2.f32 %v1475_v44  ;;  %v1330_v59 = vpop.f32.mrf.mxu2  ;;  %v1400_v18 = vpop.xlane.xlu1 %1399 }
 0x1eb   : > { %2290 = vrcp.f32 %v1511_v23  ;;  %v1370_v25 = vmax.f32 %v1328_v30, %v1351_v45  ;;  %v1215_v4 = vadd.f32 %v3002_v32, %v1157_v10  ;;  %v1437_v14 = vadd.f32 %v3009_v50, %v1400_v18 }
 0x1ec   : > { %v1274_v29 = vpop.f32.mrf.mxu1  ;;  %v1539_v17 = vand.u32 2147483647, %v1511_v23  ;;  %v1541_v13 = vand.u32 2147483648, %v1511_v23  ;;  %vm1535_vm2 = vweird.f32 %v1511_v23 }
 0x1ed   : > { %v1273_v58 = vadd.f32 %v1272_v12, %v1215_v4  ;;  %v1456_v16 = vsub.f32 0.0, %v1437_v14  ;;  %v1393_v19 = vmul.f32 %v2968_v42, %v1370_v25 }
 0x1ee   : > { %v1542_v22 = vor.u32 1.1754944e-38, %v1541_v13  ;;  %vm1540_vm5 = vcmp.eq.f32.partialorder %v1539_v17, 8.507059e+37 }
 0x1ef   : > { %v1331_v36 = vadd.f32 %v1330_v59, %v1273_v58  ;;  %v1477_v2 = vmul.f32 1.442695, %v1456_v16  ;;  %1429 = vadd.xlane.f32.xlu2 %v1393_v19 }
 0x1f0   : > { %v2289_v57 = vpop.eup %2288  ;;  %v1158_v46 = vpop.f32.mrf.mxu3 }
 0x1f1   : > { %v2291_v37 = vpop.eup %2290  ;;  %v1512_v3 = vadd.f32 1.0, %v2289_v57  ;;  %v1352_v26 = vmul.f32 0.1, %v1331_v36  ;;  %2292 = vpow2.f32 %v1477_v2 }
 0x1f2   : > { %v1531_v38 = vmul.f32 %v2291_v37, %v1511_v23  ;;  %v1332_v32 = vpop.f32.mrf.mxu2  ;;  %v1402_v31 = vpop.xlane.xlu1 %1401  ;;  %vm1536_vm1 = vweird.f32 %v2291_v37 }
 0x1f3   : > { %2294 = vrcp.f32 %v1512_v3  ;;  %v1371_v15 = vmax.f32 %v1331_v36, %v1352_v26  ;;  %v1438_v41 = vadd.f32 %v3009_v50, %v1402_v31  ;;  %vm1537_vm4 = vmor %vm1535_vm2, %vm1536_vm1  ;;  %v1555_v49 = vand.u32 2147483648, %v1512_v3 }
 0x1f4   : > { %v1532_v40 = vsub.f32 1.0, %v1531_v38  ;;  %v1553_v27 = vand.u32 2147483647, %v1512_v3  ;;  %vm1549_vm7 = vweird.f32 %v1512_v3 }
 0x1f5   : > { %v1457_v43 = vsub.f32 0.0, %v1438_v41  ;;  %v1394_v63 = vmul.f32 %v2968_v42, %v1371_v15  ;;  %v1556_v34 = vor.u32 1.1754944e-38, %v1555_v49 }
 0x1f6   : > { %v1533_v35 = vmul.f32 %v2291_v37, %v1532_v40  ;;  %vm1554_vm9 = vcmp.eq.f32.partialorder %v1553_v27, 8.507059e+37 }
 0x1f7   : > { %v2293_v20 = vpop.eup %2292  ;;  %v1479_v47 = vmul.f32 1.442695, %v1457_v43  ;;  %1431 = vadd.xlane.f32.xlu0 %v1394_v63 }
 0x1f8   : > { %v1534_v39 = vadd.f32 %v2291_v37, %v1533_v35  ;;  %v1513_v54 = vadd.f32 1.0, %v2293_v20 }
 0x1f9   : > { %v2295_v52 = vpop.eup %2294  ;;  %2296 = vpow2.f32 %v1479_v47 }
 0x1fa   : > { %v1538_v28 = vsel %vm1537_vm4, %v2291_v37, %v1534_v39  ;;  %v1545_v55 = vmul.f32 %v2295_v52, %v1512_v3  ;;  %2298 = vrcp.f32 %v1513_v54  ;;  %v1404_v56 = vpop.xlane.xlu2 %1403  ;;  %vm1550_vm6 = vweird.f32 %v2295_v52 }
 0x1fb   : > { %v1543_v42 = vsel %vm1540_vm5, %v1542_v22, %v1538_v28  ;;  %v1439_v60 = vadd.f32 %v3009_v50, %v1404_v56  ;;  %vm1551_vm8 = vmor %vm1549_vm7, %vm1550_vm6  ;;  %v1569_v53 = vand.u32 2147483648, %v1513_v54  ;;  %v1567_v30 = vand.u32 2147483647, %v1513_v54 }
 0x1fc   : > { %1797 = vst.msk [vmem:[%s3029_s9] sm:$0xff] %vm1796_vm3, %v1543_v42  ;;  %v1546_v7 = vsub.f32 1.0, %v1545_v55  ;;  %vm1563_vm11 = vweird.f32 %v1513_v54 }
 0x1fd   : > { %v1458_v62 = vsub.f32 0.0, %v1439_v60  ;;  %v1570_v59 = vor.u32 1.1754944e-38, %v1569_v53  ;;  %vm1568_vm13 = vcmp.eq.f32.partialorder %v1567_v30, 8.507059e+37 }
 0x1fe   : > { %v1547_v0 = vmul.f32 %v2295_v52, %v1546_v7 }
 0x1ff   : > { %v2297_v5 = vpop.eup %2296  ;;  %v1481_v6 = vmul.f32 1.442695, %v1458_v62 }
 0x200   : > { %v1548_v21 = vadd.f32 %v2295_v52, %v1547_v0  ;;  %v2299_v8 = vpop.eup %2298  ;;  %v1514_v9 = vadd.f32 1.0, %v2297_v5 }
 0x201   : > { %v1559_v33 = vmul.f32 %v2299_v8, %v1513_v54  ;;  %2300 = vpow2.f32 %v1481_v6  ;;  %vm1564_vm10 = vweird.f32 %v2299_v8 }
 0x202   : > { %v1552_v1 = vsel %vm1551_vm8, %v2295_v52, %v1548_v21  ;;  %2302 = vrcp.f32 %v1514_v9  ;;  %v1406_v12 = vpop.xlane.xlu2 %1405  ;;  %vm1565_vm12 = vmor %vm1563_vm11, %vm1564_vm10  ;;  %v1583_v19 = vand.u32 2147483648, %v1514_v9  ;;  %v1581_v36 = vand.u32 2147483647, %v1514_v9 }
 0x203   : > { %v1557_v11 = vsel %vm1554_vm9, %v1556_v34, %v1552_v1  ;;  %v1560_v61 = vsub.f32 1.0, %v1559_v33  ;;  %v1440_v24 = vadd.f32 %v3009_v50, %v1406_v12  ;;  %vm1577_vm15 = vweird.f32 %v1514_v9 }
 0x204   : > { %1798 = vst.msk [vmem:[%s3029_s9 + $0x8] sm:$0xff] %vm1796_vm3, %v1557_v11  ;;  %v1584_v26 = vor.u32 1.1754944e-38, %v1583_v19  ;;  %vm1582_vm1 = vcmp.eq.f32.partialorder %v1581_v36, 8.507059e+37 }
 0x205   : > { %v1561_v48 = vmul.f32 %v2299_v8, %v1560_v61  ;;  %v1459_v44 = vsub.f32 0.0, %v1440_v24 }
 0x207   : > { %v2301_v23 = vpop.eup %2300  ;;  %v1562_v51 = vadd.f32 %v2299_v8, %v1561_v48  ;;  %v1483_v45 = vmul.f32 1.442695, %v1459_v44 }
 0x208   : > { %v2303_v10 = vpop.eup %2302  ;;  %v1515_v18 = vadd.f32 1.0, %v2301_v23 }
 0x209   : > { %v1566_v25 = vsel %vm1565_vm12, %v2299_v8, %v1562_v51  ;;  %v1573_v4 = vmul.f32 %v2303_v10, %v1514_v9  ;;  %2304 = vpow2.f32 %v1483_v45  ;;  %vm1578_vm14 = vweird.f32 %v2303_v10 }
 0x20a   : > { %v1571_v14 = vsel %vm1568_vm13, %v1570_v59, %v1566_v25  ;;  %2306 = vrcp.f32 %v1515_v18  ;;  %v1408_v29 = vpop.xlane.xlu0 %1407  ;;  %vm1579_vm0 = vmor %vm1577_vm15, %vm1578_vm14  ;;  %v1597_v35 = vand.u32 2147483648, %v1515_v18  ;;  %v1595_v63 = vand.u32 2147483647, %v1515_v18 }
 0x20b   : > { %1799 = vst.msk [vmem:[%s3029_s9 + $0x10] sm:$0xff] %vm1796_vm3, %v1571_v14  ;;  %v1574_v58 = vsub.f32 1.0, %v1573_v4  ;;  %v1441_v16 = vadd.f32 %v3009_v50, %v1408_v29  ;;  %vm1591_vm4 = vweird.f32 %v1515_v18 }
 0x20c   : > { %v1598_v54 = vor.u32 1.1754944e-38, %v1597_v35  ;;  %vm1596_vm6 = vcmp.eq.f32.partialorder %v1595_v63, 8.507059e+37 }
 0x20d   : > { %v1575_v57 = vmul.f32 %v2303_v10, %v1574_v58  ;;  %v1460_v2 = vsub.f32 0.0, %v1441_v16 }
 0x20f   : > { %v2305_v37 = vpop.eup %2304  ;;  %v1576_v3 = vadd.f32 %v2303_v10, %v1575_v57  ;;  %v1485_v46 = vmul.f32 1.442695, %v1460_v2 }
 0x210   : > { %v2307_v38 = vpop.eup %2306  ;;  %v1516_v32 = vadd.f32 1.0, %v2305_v37 }
 0x211   : > { %v1580_v31 = vsel %vm1579_vm0, %v2303_v10, %v1576_v3  ;;  %v1587_v40 = vmul.f32 %v2307_v38, %v1515_v18  ;;  %2308 = vpow2.f32 %v1485_v46  ;;  %vm1592_vm2 = vweird.f32 %v2307_v38 }
 0x212   : > { %v1585_v15 = vsel %vm1582_vm1, %v1584_v26, %v1580_v31  ;;  %2310 = vrcp.f32 %v1516_v32  ;;  %v1410_v41 = vpop.xlane.xlu1 %1409  ;;  %vm1593_vm5 = vmor %vm1591_vm4, %vm1592_vm2  ;;  %v1611_v0 = vand.u32 2147483648, %v1516_v32  ;;  %v1609_v62 = vand.u32 2147483647, %v1516_v32 }
 0x213   : > { %1800 = vst.msk [vmem:[%s3029_s9 + $0x18] sm:$0xff] %vm1796_vm3, %v1585_v15  ;;  %v1588_v17 = vsub.f32 1.0, %v1587_v40  ;;  %v1442_v13 = vadd.f32 %v3009_v50, %v1410_v41  ;;  %vm1605_vm8 = vweird.f32 %v1516_v32 }
 0x214   : > { %v1612_v9 = vor.u32 1.1754944e-38, %v1611_v0  ;;  %vm1610_vm10 = vcmp.eq.f32.partialorder %v1609_v62, 8.507059e+37 }
 0x215   : > { %v1589_v43 = vmul.f32 %v2307_v38, %v1588_v17  ;;  %v1461_v20 = vsub.f32 0.0, %v1442_v13 }
 0x217   : > { %v2309_v39 = vpop.eup %2308  ;;  %v1590_v47 = vadd.f32 %v2307_v38, %v1589_v43  ;;  %v1487_v52 = vmul.f32 1.442695, %v1461_v20 }
 0x218   : > { %v2311_v22 = vpop.eup %2310  ;;  %v1517_v28 = vadd.f32 1.0, %v2309_v39 }
 0x219   : > { %v1594_v55 = vsel %vm1593_vm5, %v2307_v38, %v1590_v47  ;;  %v1601_v42 = vmul.f32 %v2311_v22, %v1516_v32  ;;  %2312 = vpow2.f32 %v1487_v52  ;;  %vm1606_vm7 = vweird.f32 %v2311_v22 }
 0x21a   : > { %v1599_v56 = vsel %vm1596_vm6, %v1598_v54, %v1594_v55  ;;  %2314 = vrcp.f32 %v1517_v28  ;;  %v1412_v7 = vpop.xlane.xlu2 %1411  ;;  %vm1607_vm9 = vmor %vm1605_vm8, %vm1606_vm7  ;;  %v1625_v48 = vand.u32 2147483648, %v1517_v28  ;;  %v1623_v44 = vand.u32 2147483647, %v1517_v28 }
 0x21b   : > { %1801 = vst.msk [vmem:[%s3029_s9 + $0x20] sm:$0xff] %vm1796_vm3, %v1599_v56  ;;  %v1602_v60 = vsub.f32 1.0, %v1601_v42  ;;  %v1443_v49 = vadd.f32 %v3009_v50, %v1412_v7  ;;  %vm1619_vm12 = vweird.f32 %v1517_v28 }
 0x21c   : > { %v1626_v18 = vor.u32 1.1754944e-38, %v1625_v48  ;;  %vm1624_vm14 = vcmp.eq.f32.partialorder %v1623_v44, 8.507059e+37 }
 0x21d   : > { %v1603_v27 = vmul.f32 %v2311_v22, %v1602_v60  ;;  %v1462_v5 = vsub.f32 0.0, %v1443_v49 }
 0x21f   : > { %v2313_v21 = vpop.eup %2312  ;;  %v1604_v6 = vadd.f32 %v2311_v22, %v1603_v27  ;;  %v1489_v8 = vmul.f32 1.442695, %v1462_v5 }
 0x220   : > { %v2315_v34 = vpop.eup %2314  ;;  %v1518_v1 = vadd.f32 1.0, %v2313_v21 }
 0x221   : > { %v1608_v33 = vsel %vm1607_vm9, %v2311_v22, %v1604_v6  ;;  %v1615_v11 = vmul.f32 %v2315_v34, %v1517_v28  ;;  %2316 = vpow2.f32 %v1489_v8  ;;  %vm1620_vm11 = vweird.f32 %v2315_v34 }
 0x222   : > { %v1613_v12 = vsel %vm1610_vm10, %v1612_v9, %v1608_v33  ;;  %2318 = vrcp.f32 %v1518_v1  ;;  %v1414_v61 = vpop.xlane.xlu0 %1413  ;;  %vm1621_vm13 = vmor %vm1619_vm12, %vm1620_vm11  ;;  %v1639_v57 = vand.u32 2147483648, %v1518_v1  ;;  %v1637_v2 = vand.u32 2147483647, %v1518_v1 }
 0x223   : > { %1802 = vst.msk [vmem:[%s3029_s9 + $0x28] sm:$0xff] %vm1796_vm3, %v1613_v12  ;;  %v1616_v24 = vsub.f32 1.0, %v1615_v11  ;;  %v1444_v53 = vadd.f32 %v3009_v50, %v1414_v61  ;;  %vm1633_vm0 = vweird.f32 %v1518_v1 }
 0x224   : > { %v1640_v32 = vor.u32 1.1754944e-38, %v1639_v57  ;;  %vm1638_vm2 = vcmp.eq.f32.partialorder %v1637_v2, 8.507059e+37 }
 0x225   : > { %v1617_v30 = vmul.f32 %v2315_v34, %v1616_v24  ;;  %v1463_v23 = vsub.f32 0.0, %v1444_v53 }
 0x227   : > { %v2317_v51 = vpop.eup %2316  ;;  %v1618_v45 = vadd.f32 %v2315_v34, %v1617_v30  ;;  %v1491_v10 = vmul.f32 1.442695, %v1463_v23 }
 0x228   : > { %v2319_v59 = vpop.eup %2318  ;;  %v1519_v25 = vadd.f32 1.0, %v2317_v51 }
 0x229   : > { %v1622_v4 = vsel %vm1621_vm13, %v2315_v34, %v1618_v45  ;;  %v1629_v14 = vmul.f32 %v2319_v59, %v1518_v1  ;;  %2320 = vpow2.f32 %v1491_v10  ;;  %vm1634_vm15 = vweird.f32 %v2319_v59 }
 0x22a   : > { %v1627_v29 = vsel %vm1624_vm14, %v1626_v18, %v1622_v4  ;;  %2322 = vrcp.f32 %v1519_v25  ;;  %v1416_v58 = vpop.xlane.xlu1 %1415  ;;  %vm1635_vm1 = vmor %vm1633_vm0, %vm1634_vm15  ;;  %v1653_v43 = vand.u32 2147483648, %v1519_v25  ;;  %v1651_v20 = vand.u32 2147483647, %v1519_v25 }
 0x22b   : > { %1803 = vst.msk [vmem:[%s3029_s9 + $0x30] sm:$0xff] %vm1796_vm3, %v1627_v29  ;;  %v1630_v16 = vsub.f32 1.0, %v1629_v14  ;;  %v1445_v19 = vadd.f32 %v3009_v50, %v1416_v58  ;;  %vm1647_vm5 = vweird.f32 %v1519_v25 }
 0x22c   : > { %v1654_v28 = vor.u32 1.1754944e-38, %v1653_v43  ;;  %vm1652_vm7 = vcmp.eq.f32.partialorder %v1651_v20, 8.507059e+37 }
 0x22d   : > { %v1631_v36 = vmul.f32 %v2319_v59, %v1630_v16  ;;  %v1464_v37 = vsub.f32 0.0, %v1445_v19 }
 0x22f   : > { %v2321_v3 = vpop.eup %2320  ;;  %v1632_v46 = vadd.f32 %v2319_v59, %v1631_v36  ;;  %v1493_v38 = vmul.f32 1.442695, %v1464_v37 }
 0x230   : > { %v2323_v26 = vpop.eup %2322  ;;  %v1520_v31 = vadd.f32 1.0, %v2321_v3 }
 0x231   : > { %v1636_v40 = vsel %vm1635_vm1, %v2319_v59, %v1632_v46  ;;  %v1643_v15 = vmul.f32 %v2323_v26, %v1519_v25  ;;  %2324 = vpow2.f32 %v1493_v38  ;;  %vm1648_vm4 = vweird.f32 %v2323_v26 }
 0x232   : > { %v1641_v41 = vsel %vm1638_vm2, %v1640_v32, %v1636_v40  ;;  %2326 = vrcp.f32 %v1520_v31  ;;  %v1418_v17 = vpop.xlane.xlu2 %1417  ;;  %vm1649_vm6 = vmor %vm1647_vm5, %vm1648_vm4  ;;  %v1667_v27 = vand.u32 2147483648, %v1520_v31  ;;  %v1665_v5 = vand.u32 2147483647, %v1520_v31 }
 0x233   : > { %1804 = vst.msk [vmem:[%s3029_s9 + $0x38] sm:$0xff] %vm1796_vm3, %v1641_v41  ;;  %v1644_v13 = vsub.f32 1.0, %v1643_v15  ;;  %v1446_v35 = vadd.f32 %v3009_v50, %v1418_v17  ;;  %vm1661_vm9 = vweird.f32 %v1520_v31 }
 0x234   : > { %v1668_v1 = vor.u32 1.1754944e-38, %v1667_v27  ;;  %vm1666_vm11 = vcmp.eq.f32.partialorder %v1665_v5, 8.507059e+37 }
 0x235   : > { %v1645_v63 = vmul.f32 %v2323_v26, %v1644_v13  ;;  %v1465_v39 = vsub.f32 0.0, %v1446_v35 }
 0x237   : > { %v2325_v47 = vpop.eup %2324  ;;  %v1646_v52 = vadd.f32 %v2323_v26, %v1645_v63  ;;  %v1495_v22 = vmul.f32 1.442695, %v1465_v39 }
 0x238   : > { %v2327_v54 = vpop.eup %2326  ;;  %v1521_v55 = vadd.f32 1.0, %v2325_v47 }
 0x239   : > { %v1650_v42 = vsel %vm1649_vm6, %v2323_v26, %v1646_v52  ;;  %v1657_v56 = vmul.f32 %v2327_v54, %v1520_v31  ;;  %2328 = vpow2.f32 %v1495_v22  ;;  %vm1662_vm8 = vweird.f32 %v2327_v54 }
 0x23a   : > { %v1655_v7 = vsel %vm1652_vm7, %v1654_v28, %v1650_v42  ;;  %2330 = vrcp.f32 %v1521_v55  ;;  %v1420_v60 = vpop.xlane.xlu0 %1419  ;;  %vm1663_vm10 = vmor %vm1661_vm9, %vm1662_vm8  ;;  %v1681_v30 = vand.u32 2147483648, %v1521_v55  ;;  %v1679_v23 = vand.u32 2147483647, %v1521_v55 }
 0x23b   : > { %1805 = vst.msk [vmem:[%s3029_s9 + $0x40] sm:$0xff] %vm1796_vm3, %v1655_v7  ;;  %v1658_v49 = vsub.f32 1.0, %v1657_v56  ;;  %v1447_v0 = vadd.f32 %v3009_v50, %v1420_v60  ;;  %vm1675_vm13 = vweird.f32 %v1521_v55 }
 0x23c   : > { %v1682_v25 = vor.u32 1.1754944e-38, %v1681_v30  ;;  %vm1680_vm15 = vcmp.eq.f32.partialorder %v1679_v23, 8.507059e+37 }
 0x23d   : > { %v1659_v62 = vmul.f32 %v2327_v54, %v1658_v49  ;;  %v1466_v21 = vsub.f32 0.0, %v1447_v0 }
 0x23f   : > { %v2329_v6 = vpop.eup %2328  ;;  %v1660_v8 = vadd.f32 %v2327_v54, %v1659_v62  ;;  %v1497_v34 = vmul.f32 1.442695, %v1466_v21 }
 0x240   : > { %v2331_v9 = vpop.eup %2330  ;;  %v1522_v33 = vadd.f32 1.0, %v2329_v6 }
 0x241   : > { %v1664_v11 = vsel %vm1663_vm10, %v2327_v54, %v1660_v8  ;;  %v1671_v12 = vmul.f32 %v2331_v9, %v1521_v55  ;;  %2332 = vpow2.f32 %v1497_v34  ;;  %vm1676_vm12 = vweird.f32 %v2331_v9 }
 0x242   : > { %v1669_v61 = vsel %vm1666_vm11, %v1668_v1, %v1664_v11  ;;  %2334 = vrcp.f32 %v1522_v33  ;;  %v1422_v24 = vpop.xlane.xlu1 %1421  ;;  %vm1677_vm14 = vmor %vm1675_vm13, %vm1676_vm12  ;;  %v1695_v36 = vand.u32 2147483648, %v1522_v33  ;;  %v1693_v37 = vand.u32 2147483647, %v1522_v33 }
 0x243   : > { %1806 = vst.msk [vmem:[%s3029_s9 + $0x48] sm:$0xff] %vm1796_vm3, %v1669_v61  ;;  %v1672_v53 = vsub.f32 1.0, %v1671_v12  ;;  %v1448_v48 = vadd.f32 %v3009_v50, %v1422_v24  ;;  %vm1689_vm1 = vweird.f32 %v1522_v33 }
 0x244   : > { %v1696_v31 = vor.u32 1.1754944e-38, %v1695_v36  ;;  %vm1694_vm4 = vcmp.eq.f32.partialorder %v1693_v37, 8.507059e+37 }
 0x245   : > { %v1673_v44 = vmul.f32 %v2331_v9, %v1672_v53  ;;  %v1467_v51 = vsub.f32 0.0, %v1448_v48 }
 0x247   : > { %v2333_v45 = vpop.eup %2332  ;;  %v1674_v10 = vadd.f32 %v2331_v9, %v1673_v44  ;;  %v1499_v59 = vmul.f32 1.442695, %v1467_v51 }
 0x248   : > { %v2335_v18 = vpop.eup %2334  ;;  %v1523_v4 = vadd.f32 1.0, %v2333_v45 }
 0x249   : > { %v1678_v14 = vsel %vm1677_vm14, %v2331_v9, %v1674_v10  ;;  %v1685_v29 = vmul.f32 %v2335_v18, %v1522_v33  ;;  %2336 = vpow2.f32 %v1499_v59  ;;  %vm1690_vm0 = vweird.f32 %v2335_v18 }
 0x24a   : > { %v1683_v58 = vsel %vm1680_vm15, %v1682_v25, %v1678_v14  ;;  %2338 = vrcp.f32 %v1523_v4  ;;  %v1424_v16 = vpop.xlane.xlu2 %1423  ;;  %vm1691_vm2 = vmor %vm1689_vm1, %vm1690_vm0  ;;  %v1709_v63 = vand.u32 2147483648, %v1523_v4  ;;  %v1707_v39 = vand.u32 2147483647, %v1523_v4 }
 0x24b   : > { %1807 = vst.msk [vmem:[%s3029_s9 + $0x50] sm:$0xff] %vm1796_vm3, %v1683_v58  ;;  %v1686_v19 = vsub.f32 1.0, %v1685_v29  ;;  %v1449_v57 = vadd.f32 %v3009_v50, %v1424_v16  ;;  %vm1703_vm6 = vweird.f32 %v1523_v4 }
 0x24c   : > { %v1710_v55 = vor.u32 1.1754944e-38, %v1709_v63  ;;  %vm1708_vm8 = vcmp.eq.f32.partialorder %v1707_v39, 8.507059e+37 }
 0x24d   : > { %v1687_v2 = vmul.f32 %v2335_v18, %v1686_v19  ;;  %v1468_v3 = vsub.f32 0.0, %v1449_v57 }
 0x24f   : > { %v2337_v46 = vpop.eup %2336  ;;  %v1688_v38 = vadd.f32 %v2335_v18, %v1687_v2  ;;  %v1501_v26 = vmul.f32 1.442695, %v1468_v3 }
 0x250   : > { %v2339_v32 = vpop.eup %2338  ;;  %v1524_v40 = vadd.f32 1.0, %v2337_v46 }
 0x251   : > { %v1692_v15 = vsel %vm1691_vm2, %v2335_v18, %v1688_v38  ;;  %v1699_v41 = vmul.f32 %v2339_v32, %v1523_v4  ;;  %2340 = vpow2.f32 %v1501_v26  ;;  %vm1704_vm5 = vweird.f32 %v2339_v32 }
 0x252   : > { %v1697_v17 = vsel %vm1694_vm4, %v1696_v31, %v1692_v15  ;;  %2342 = vrcp.f32 %v1524_v40  ;;  %v1426_v13 = vpop.xlane.xlu0 %1425  ;;  %vm1705_vm7 = vmor %vm1703_vm6, %vm1704_vm5  ;;  %v1723_v62 = vand.u32 2147483648, %v1524_v40  ;;  %v1721_v21 = vand.u32 2147483647, %v1524_v40 }
 0x253   : > { %1808 = vst.msk [vmem:[%s3029_s9 + $0x58] sm:$0xff] %vm1796_vm3, %v1697_v17  ;;  %v1700_v35 = vsub.f32 1.0, %v1699_v41  ;;  %v1450_v43 = vadd.f32 %v3009_v50, %v1426_v13  ;;  %vm1717_vm10 = vweird.f32 %v1524_v40 }
 0x254   : > { %v1724_v33 = vor.u32 1.1754944e-38, %v1723_v62  ;;  %vm1722_vm12 = vcmp.eq.f32.partialorder %v1721_v21, 8.507059e+37 }
 0x255   : > { %v1701_v20 = vmul.f32 %v2339_v32, %v1700_v35  ;;  %v1469_v47 = vsub.f32 0.0, %v1450_v43 }
 0x257   : > { %v2341_v52 = vpop.eup %2340  ;;  %v1702_v22 = vadd.f32 %v2339_v32, %v1701_v20  ;;  %v1503_v54 = vmul.f32 1.442695, %v1469_v47 }
 0x258   : > { %v2343_v28 = vpop.eup %2342  ;;  %v1525_v42 = vadd.f32 1.0, %v2341_v52 }
 0x259   : > { %v1706_v56 = vsel %vm1705_vm7, %v2339_v32, %v1702_v22  ;;  %v1713_v7 = vmul.f32 %v2343_v28, %v1524_v40  ;;  %2344 = vpow2.f32 %v1503_v54  ;;  %vm1718_vm9 = vweird.f32 %v2343_v28 }
 0x25a   : > { %v1711_v60 = vsel %vm1708_vm8, %v1710_v55, %v1706_v56  ;;  %2346 = vrcp.f32 %v1525_v42  ;;  %v1428_v49 = vpop.xlane.xlu1 %1427  ;;  %vm1719_vm11 = vmor %vm1717_vm10, %vm1718_vm9  ;;  %v1737_v44 = vand.u32 2147483648, %v1525_v42  ;;  %v1735_v51 = vand.u32 2147483647, %v1525_v42 }
 0x25b   : > { %1809 = vst.msk [vmem:[%s3029_s9 + $0x60] sm:$0xff] %vm1796_vm3, %v1711_v60  ;;  %v1714_v0 = vsub.f32 1.0, %v1713_v7  ;;  %v1451_v27 = vadd.f32 %v3009_v50, %v1428_v49  ;;  %vm1731_vm14 = vweird.f32 %v1525_v42 }
 0x25c   : > { %v1738_v4 = vor.u32 1.1754944e-38, %v1737_v44  ;;  %vm1736_vm0 = vcmp.eq.f32.partialorder %v1735_v51, 8.507059e+37 }
 0x25d   : > { %v1715_v5 = vmul.f32 %v2343_v28, %v1714_v0  ;;  %v1470_v6 = vsub.f32 0.0, %v1451_v27 }
 0x25f   : > { %v2345_v8 = vpop.eup %2344  ;;  %v1716_v34 = vadd.f32 %v2343_v28, %v1715_v5  ;;  %v1505_v9 = vmul.f32 1.442695, %v1470_v6 }
 0x260   : > { %v2347_v1 = vpop.eup %2346  ;;  %v1526_v11 = vadd.f32 1.0, %v2345_v8 }
 0x261   : > { %v1720_v12 = vsel %vm1719_vm11, %v2343_v28, %v1716_v34  ;;  %v1727_v61 = vmul.f32 %v2347_v1, %v1525_v42  ;;  %2348 = vpow2.f32 %v1505_v9  ;;  %vm1732_vm13 = vweird.f32 %v2347_v1 }
 0x262   : > { %v1725_v24 = vsel %vm1722_vm12, %v1724_v33, %v1720_v12  ;;  %2350 = vrcp.f32 %v1526_v11  ;;  %v1430_v53 = vpop.xlane.xlu2 %1429  ;;  %vm1733_vm15 = vmor %vm1731_vm14, %vm1732_vm13  ;;  %v1751_v2 = vand.u32 2147483648, %v1526_v11  ;;  %v1749_v3 = vand.u32 2147483647, %v1526_v11 }
 0x263   : > { %1810 = vst.msk [vmem:[%s3029_s9 + $0x68] sm:$0xff] %vm1796_vm3, %v1725_v24  ;;  %v1728_v48 = vsub.f32 1.0, %v1727_v61  ;;  %v1452_v30 = vadd.f32 %v3009_v50, %v1430_v53  ;;  %vm1745_vm2 = vweird.f32 %v1526_v11 }
 0x264   : > { %v1752_v40 = vor.u32 1.1754944e-38, %v1751_v2  ;;  %vm1750_vm5 = vcmp.eq.f32.partialorder %v1749_v3, 8.507059e+37 }
 0x265   : > { %v1729_v23 = vmul.f32 %v2347_v1, %v1728_v48  ;;  %v1471_v45 = vsub.f32 0.0, %v1452_v30 }
 0x267   : > { %v2349_v10 = vpop.eup %2348  ;;  %v1730_v59 = vadd.f32 %v2347_v1, %v1729_v23  ;;  %v1507_v18 = vmul.f32 1.442695, %v1471_v45 }
 0x268   : > { %v2351_v25 = vpop.eup %2350  ;;  %v1527_v14 = vadd.f32 1.0, %v2349_v10 }
 0x269   : > { %v1734_v29 = vsel %vm1733_vm15, %v2347_v1, %v1730_v59  ;;  %v1741_v58 = vmul.f32 %v2351_v25, %v1526_v11  ;;  %2352 = vpow2.f32 %v1507_v18  ;;  %vm1746_vm1 = vweird.f32 %v2351_v25 }
 0x26a   : > { %v1739_v16 = vsel %vm1736_vm0, %v1738_v4, %v1734_v29  ;;  %2354 = vrcp.f32 %v1527_v14  ;;  %v1432_v19 = vpop.xlane.xlu0 %1431  ;;  %vm1747_vm4 = vmor %vm1745_vm2, %vm1746_vm1  ;;  %v1765_v35 = vand.u32 2147483648, %v1527_v14  ;;  %v1763_v63 = vand.u32 2147483647, %v1527_v14 }
 0x26b   : > { %1811 = vst.msk [vmem:[%s3029_s9 + $0x70] sm:$0xff] %vm1796_vm3, %v1739_v16  ;;  %v1742_v57 = vsub.f32 1.0, %v1741_v58  ;;  %v1453_v36 = vadd.f32 %v3009_v50, %v1432_v19  ;;  %vm1759_vm7 = vweird.f32 %v1527_v14 }
 0x26c   : > { %v1766_v52 = vor.u32 1.1754944e-38, %v1765_v35  ;;  %vm1764_vm9 = vcmp.eq.f32.partialorder %v1763_v63, 8.507059e+37 }
 0x26d   : > { %v1743_v37 = vmul.f32 %v2351_v25, %v1742_v57  ;;  %v1472_v46 = vsub.f32 0.0, %v1453_v36 }
 0x26f   : > { %v2353_v38 = vpop.eup %2352  ;;  %v1744_v26 = vadd.f32 %v2351_v25, %v1743_v37  ;;  %v1509_v32 = vmul.f32 1.442695, %v1472_v46 }
 0x270   : > { %v2355_v31 = vpop.eup %2354  ;;  %v1528_v15 = vadd.f32 1.0, %v2353_v38 }
 0x271   : > { %v1748_v41 = vsel %vm1747_vm4, %v2351_v25, %v1744_v26  ;;  %v1755_v17 = vmul.f32 %v2355_v31, %v1527_v14  ;;  %2356 = vpow2.f32 %v1509_v32  ;;  %vm1760_vm6 = vweird.f32 %v2355_v31 }
 0x272   : > { %v1753_v13 = vsel %vm1750_vm5, %v1752_v40, %v1748_v41  ;;  %2358 = vrcp.f32 %v1528_v15  ;;  %vm1761_vm8 = vmor %vm1759_vm7, %vm1760_vm6  ;;  %v1779_v56 = vand.u32 2147483648, %v1528_v15  ;;  %v1777_v60 = vand.u32 2147483647, %v1528_v15 }
 0x273   : > { %1812 = vst.msk [vmem:[%s3029_s9 + $0x78] sm:$0xff] %vm1796_vm3, %v1753_v13  ;;  %v1756_v50 = vsub.f32 1.0, %v1755_v17  ;;  %vm1773_vm11 = vweird.f32 %v1528_v15 }
 0x274   : > { %v1780_v27 = vor.u32 1.1754944e-38, %v1779_v56  ;;  %vm1778_vm13 = vcmp.eq.f32.partialorder %v1777_v60, 8.507059e+37 }
 0x275   : > { %v1757_v43 = vmul.f32 %v2355_v31, %v1756_v50 }
 0x277   : > { %v2357_v20 = vpop.eup %2356  ;;  %v1758_v39 = vadd.f32 %v2355_v31, %v1757_v43 }
 0x278   : > { %v2359_v47 = vpop.eup %2358  ;;  %v1529_v22 = vadd.f32 1.0, %v2357_v20 }
 0x279   : > { %v1762_v54 = vsel %vm1761_vm8, %v2355_v31, %v1758_v39  ;;  %v1769_v28 = vmul.f32 %v2359_v47, %v1528_v15  ;;  %vm1774_vm10 = vweird.f32 %v2359_v47 }
 0x27a   : > { %v1767_v55 = vsel %vm1764_vm9, %v1766_v52, %v1762_v54  ;;  %2360 = vrcp.f32 %v1529_v22  ;;  %vm1775_vm12 = vmor %vm1773_vm11, %vm1774_vm10  ;;  %v1793_v8 = vand.u32 2147483648, %v1529_v22  ;;  %v1791_v9 = vand.u32 2147483647, %v1529_v22 }
 0x27b   : > { %1813 = vst.msk [vmem:[%s3029_s9 + $0x80] sm:$0xff] %vm1796_vm3, %v1767_v55  ;;  %v1770_v42 = vsub.f32 1.0, %v1769_v28  ;;  %vm1787_vm15 = vweird.f32 %v1529_v22 }
 0x27c   : > { %v1794_v33 = vor.u32 1.1754944e-38, %v1793_v8  ;;  %vm1792_vm1 = vcmp.eq.f32.partialorder %v1791_v9, 8.507059e+37 }
 0x27d   : > { %v1771_v7 = vmul.f32 %v2359_v47, %v1770_v42 }
 0x27f   : > { %v1772_v49 = vadd.f32 %v2359_v47, %v1771_v7 }
 0x280   : > { %v2361_v0 = vpop.eup %2360 }
 0x281   : > { %v1776_v62 = vsel %vm1775_vm12, %v2359_v47, %v1772_v49  ;;  %v1783_v5 = vmul.f32 %v2361_v0, %v1529_v22  ;;  %vm1788_vm14 = vweird.f32 %v2361_v0 }
 0x282   : > { %v1781_v21 = vsel %vm1778_vm13, %v1780_v27, %v1776_v62  ;;  %vm1789_vm0 = vmor %vm1787_vm15, %vm1788_vm14 }
 0x283   : > { %1814 = vst.msk [vmem:[%s3029_s9 + $0x88] sm:$0xff] %vm1796_vm3, %v1781_v21  ;;  %v1784_v6 = vsub.f32 1.0, %v1783_v5 }
 0x285   : > { %v1785_v34 = vmul.f32 %v2361_v0, %v1784_v6 }
 0x287   : > { %v1786_v1 = vadd.f32 %v2361_v0, %v1785_v34 }
 0x289   : > { %v1790_v11 = vsel %vm1789_vm0, %v2361_v0, %v1786_v1 }
 0x28a   : > { %v1795_v12 = vsel %vm1792_vm1, %v1794_v33, %v1790_v11 }
 0x28b   : > { %1815 = vst.msk [vmem:[%s3029_s9 + $0x90] sm:$0xff] %vm1796_vm3, %v1795_v12 }
 0x28c PF: > { %s3108_s13 = smov %s2628_s20  ;;  %p18_p4 = scmp.ge.s32.totalorder %s2628_s20, 4  }
 0x28d   : > { %s3109_s20 = smov %s2516_s21  ;;  %s3110_s21 = smov %s2520_s22 }
 0x28e   : > { %s3111_s22 = smov %s2639_s30  ;;  %s3112_s23 = smov %s3108_s13 }
 0x28f   :  { %20 = sbr.rel (!%p18_p4) target bundleno = 7 (0x7), region = 92 }
 0x294   :  { %1838 = vsyncpa [#allocation4], 1 }
 0x295   :  { %1840 = vsyncpa [#allocation4 + $0x1], 1 }
 0x296   :  { %1841 = vsyncpa [#allocation6], 1 }
 0x297   :  { %1842 = vsyncpa [#allocation9], 1 }

</bundles_post_ra>
